<compile_context>
chip_gen: v7x
topology: tpu7x:2x2x1
jax: 0.10.0
libtpu: 0.0.40
codegen_flags: <defaults>
</compile_context>

<pallas_src>
from functools import partial

import jax
import jax.numpy as jnp
from jax.experimental import pallas as pl
from jax.experimental.pallas import tpu as pltpu

EPS = 1e-5  # nn.BatchNorm3d default eps


# ---------------------------------------------------------------------------
# Pass 1: 3x3x3 conv as 27 accumulated MXU matmuls over halo'd depth slices,
#         fused with per-slice BN partial statistics (sum, sum of squares).
# ---------------------------------------------------------------------------
def _conv3d_stats_kernel(x0_ref, x1_ref, x2_ref, w_ref, y_ref, stats_ref, *,
                         H, W):
    C = x0_ref.shape[-1]
    Cout = w_ref.shape[-1]
    HW = H * W
    acc = jnp.zeros((HW, Cout), jnp.float32)
    x_slabs = (x0_ref[0, 0], x1_ref[0, 0], x2_ref[0, 0])   # (H+2, W+2, C) bf16
    for kd in range(3):                                    # static unroll: 27 taps
        xk = x_slabs[kd]
        for kh in range(3):
            for kw in range(3):
                tap = (kd * 3 + kh) * 3 + kw
                slab = xk[kh:kh + H, kw:kw + W, :].reshape(HW, C)
                acc = acc + jnp.dot(slab, w_ref[tap],
                                    preferred_element_type=jnp.float32)
    y_ref[0, 0] = acc
    s = jnp.sum(acc, axis=0, keepdims=True)                # per-channel partials
    ss = jnp.sum(acc * acc, axis=0, keepdims=True)
    stats_ref[0, 0] = jnp.concatenate([s, ss], axis=0)     # (2, Cout)


def conv3d_stats_pass(xpad_bf16, w_taps_bf16):
    N, Dp, Hp, Wp, C = xpad_bf16.shape
    D, H, W = Dp - 2, Hp - 2, Wp - 2
    Cout = w_taps_bf16.shape[-1]
    HW = H * W
    return pl.pallas_call(
        partial(_conv3d_stats_kernel, H=H, W=W),
        out_shape=(jax.ShapeDtypeStruct((N, D, HW, Cout), jnp.float32),
                   jax.ShapeDtypeStruct((N, D, 2, Cout), jnp.float32)),
        grid=(N, D),
        in_specs=[
            # same padded array three times, shifted along depth (halo = 3x, not 27x)
            pl.BlockSpec((1, 1, Hp, Wp, C), lambda n, d: (n, d, 0, 0, 0)),
            pl.BlockSpec((1, 1, Hp, Wp, C), lambda n, d: (n, d + 1, 0, 0, 0)),
            pl.BlockSpec((1, 1, Hp, Wp, C), lambda n, d: (n, d + 2, 0, 0, 0)),
            # weights resident in VMEM across all grid steps
            pl.BlockSpec((27, C, Cout), lambda n, d: (0, 0, 0)),
        ],
        out_specs=(
            pl.BlockSpec((1, 1, HW, Cout), lambda n, d: (n, d, 0, 0)),
            pl.BlockSpec((1, 1, 2, Cout), lambda n, d: (n, d, 0, 0)),
        ),
        compiler_params=pltpu.CompilerParams(
            dimension_semantics=("parallel", "parallel")),
    )(xpad_bf16, xpad_bf16, xpad_bf16, w_taps_bf16)


# ---------------------------------------------------------------------------
# Pass 2: lane-dense tiled  y*scale + shift -> ReLU (-> + residual)
# ---------------------------------------------------------------------------
def _bn_relu_kernel(add_residual, *refs):
    if add_residual:
        y_ref, scale_ref, shift_ref, res_ref, out_ref = refs
    else:
        y_ref, scale_ref, shift_ref, out_ref = refs
    y = jnp.maximum(y_ref[...] * scale_ref[...] + shift_ref[...], 0.0)
    if add_residual:
        y = y + res_ref[...]
    out_ref[...] = y.astype(out_ref.dtype)


def _pick_row_tile(mg):
    for tm in (2048, 1024, 512, 256, 128, 64, 32, 16, 8):
        if mg % tm == 0:
            return tm
    return mg


def bn_relu_pass(y2d, scale_row, shift_row, residual2d=None):
    Mg, L = y2d.shape
    TM = _pick_row_tile(Mg)
    add_res = residual2d is not None
    in_specs = [
        pl.BlockSpec((TM, L), lambda i: (i, 0)),
        pl.BlockSpec((1, L), lambda i: (0, 0)),
        pl.BlockSpec((1, L), lambda i: (0, 0)),
    ]
    args = [y2d, scale_row, shift_row]
    if add_res:
        in_specs.append(pl.BlockSpec((TM, L), lambda i: (i, 0)))
        args.append(residual2d)
    return pl.pallas_call(
        partial(_bn_relu_kernel, add_res),
        out_shape=jax.ShapeDtypeStruct((Mg, L), jnp.float32),
        grid=(Mg // TM,),
        in_specs=in_specs,
        out_specs=pl.BlockSpec((TM, L), lambda i: (i, 0)),
        compiler_params=pltpu.CompilerParams(
            dimension_semantics=("parallel",)),
    )(*args)


# ---------------------------------------------------------------------------
# Conv3dBlock = conv(3x3x3, pad 1) -> BatchNorm3d(batch stats) -> ReLU
# ---------------------------------------------------------------------------
def _conv_bn_relu_block(x_ndhwc, w_taps_bf16, gamma, beta, residual_ndhwc=None):
    N, D, H, W, _ = x_ndhwc.shape
    Cout = w_taps_bf16.shape[-1]
    M = N * D * H * W

    xpad = jnp.pad(x_ndhwc.astype(jnp.bfloat16),
                   ((0, 0), (1, 1), (1, 1), (1, 1), (0, 0)))
    y, stats = conv3d_stats_pass(xpad, w_taps_bf16)        # y: (N, D, HW, Cout) f32

    tot = jnp.sum(stats, axis=(0, 1))                      # (2, Cout) tiny XLA reduce
    mean = tot[0] / M
    var = jnp.maximum(tot[1] / M - mean * mean, 0.0)       # biased var (BN training)
    scale = gamma * jax.lax.rsqrt(var + EPS)
    shift = beta - mean * scale

    # Lane-dense fold: pack G consecutive rows so the lane axis is 128 wide.
    G = 128 // Cout if (128 % Cout == 0 and M % max(128 // Cout, 1) == 0) else 1
    L = G * Cout
    y2d = y.reshape(M // G, L)                             # free row-major reshape
    scale_row = jnp.tile(scale, G).reshape(1, L)
    shift_row = jnp.tile(shift, G).reshape(1, L)
    res2d = None
    if residual_ndhwc is not None:
        res2d = residual_ndhwc.reshape(M // G, L)
    out2d = bn_relu_pass(y2d, scale_row, shift_row, res2d)
    return out2d.reshape(N, D, H, W, Cout)


def _torch_weight_to_taps(w):
    # (Cout, Cin, kd, kh, kw) -> (27, Cin, Cout), tap index = (kd*3+kh)*3+kw
    cout, cin = w.shape[:2]
    return jnp.transpose(w, (2, 3, 4, 1, 0)).reshape(27, cin, cout)


# ---------------------------------------------------------------------------
# ResBlock forward: Conv3dBlock -> Conv3dBlock -> + residual
# ---------------------------------------------------------------------------
@jax.jit
def resblock_forward(x_ncdhw, w1, g1, b1, w2, g2, b2):
    x = jnp.transpose(x_ncdhw, (0, 2, 3, 4, 1))            # NCDHW -> NDHWC
    w1t = _torch_weight_to_taps(w1).astype(jnp.bfloat16)
    w2t = _torch_weight_to_taps(w2).astype(jnp.bfloat16)
    out1 = _conv_bn_relu_block(x, w1t, g1, b1)                        # block 1
    out2 = _conv_bn_relu_block(out1, w2t, g2, b2, residual_ndhwc=x)   # block 2 + x
    return jnp.transpose(out2, (0, 4, 1, 2, 3))            # back to NCDHW
    # TODO(synk): eval-mode BN (running stats) not modeled; matches the module's
    # default training-mode forward which normalizes with batch statistics.


# ---------------------------------------------------------------------------
# Pure-JAX f32 reference (for correctness check)
# ---------------------------------------------------------------------------
def ref_forward(x_ncdhw, w1, g1, b1, w2, g2, b2):
    def block(x, tw, g, b):
        rhs = jnp.transpose(tw, (2, 3, 4, 1, 0))           # DHWIO
        y = jax.lax.conv_general_dilated(
            x, rhs, window_strides=(1, 1, 1),
            padding=((1, 1), (1, 1), (1, 1)),
            dimension_numbers=('NDHWC', 'DHWIO', 'NDHWC'))
        mean = jnp.mean(y, axis=(0, 1, 2, 3), keepdims=True)
        var = jnp.mean(jnp.square(y - mean), axis=(0, 1, 2, 3), keepdims=True)
        y = (y - mean) * jax.lax.rsqrt(var + EPS) * g + b
        return jnp.maximum(y, 0.0)

    x = jnp.transpose(x_ncdhw, (0, 2, 3, 4, 1))
    out = block(block(x, w1, g1, b1), w2, g2, b2) + x
    return jnp.transpose(out, (0, 4, 1, 2, 3))


if __name__ == "__main__":
    # ResBlock(inplanes=32, planes=32, norm_cfg='BN', activation_cfg='ReLU')
    N, C, D, H, W = 2, 32, 8, 8, 8
    key = jax.random.PRNGKey(0)
    kx, kw1, kw2, kg1, kb1, kg2, kb2 = jax.random.split(key, 7)

    x = jax.random.normal(kx, (N, C, D, H, W), jnp.float32)
    w1 = jax.random.normal(kw1, (C, C, 3, 3, 3), jnp.float32) * 0.05
    w2 = jax.random.normal(kw2, (C, C, 3, 3, 3), jnp.float32) * 0.05
    g1 = 1.0 + 0.1 * jax.random.normal(kg1, (C,), jnp.float32)
    b1 = 0.1 * jax.random.normal(kb1, (C,), jnp.float32)
    g2 = 1.0 + 0.1 * jax.random.normal(kg2, (C,), jnp.float32)
    b2 = 0.1 * jax.random.normal(kb2, (C,), jnp.float32)

    out = jax.block_until_ready(resblock_forward(x, w1, g1, b1, w2, g2, b2))
    ref = jax.block_until_ready(ref_forward(x, w1, g1, b1, w2, g2, b2))

    assert out.shape == (N, C, D, H, W)
    max_err = float(jnp.max(jnp.abs(out - ref)))
    # bf16 activations/weights on the MXU vs f32 reference -> small quantization error
    assert jnp.allclose(out, ref, atol=3e-2, rtol=3e-2), max_err

    print("KERNEL_OK")
</pallas_src>

<mosaic_0001>
module attributes {stable_mosaic.version = 11 : i64} {
  func.func @_bn_relu_kernel(%arg0: i32, %arg1: memref<256x128xf32, #tpu.memory_space<vmem>>, %arg2: memref<1x128xf32, #tpu.memory_space<vmem>>, %arg3: memref<1x128xf32, #tpu.memory_space<vmem>>, %arg4: memref<256x128xf32, #tpu.memory_space<vmem>>) attributes {dimension_semantics = [#tpu.dimension_semantics<parallel>], iteration_bounds = array<i64: 1>, scalar_prefetch = 0 : i64, scratch_operands = 0 : i64, tpu.core_type = #tpu.core_type<tc>, window_params = [{transform_indices = @transform_0, window_bounds = array<i64: 256, 128>}, {pipeline_mode = #tpu.pipeline_mode<synchronous>, transform_indices = @transform_1, window_bounds = array<i64: 1, 128>}, {pipeline_mode = #tpu.pipeline_mode<synchronous>, transform_indices = @transform_2, window_bounds = array<i64: 1, 128>}, {transform_indices = @transform_3, window_bounds = array<i64: 256, 128>}]} {
    %c0 = arith.constant 0 : index
    %c0_0 = arith.constant 0 : index
    %0 = vector.load %arg1[%c0, %c0_0] : memref<256x128xf32, #tpu.memory_space<vmem>>, vector<256x128xf32>
    %c0_1 = arith.constant 0 : index
    %c0_2 = arith.constant 0 : index
    %1 = vector.load %arg2[%c0_1, %c0_2] : memref<1x128xf32, #tpu.memory_space<vmem>>, vector<1x128xf32>
    %2 = vector.broadcast %1 : vector<1x128xf32> to vector<256x128xf32>
    %3 = arith.mulf %0, %2 : vector<256x128xf32>
    %c0_3 = arith.constant 0 : index
    %c0_4 = arith.constant 0 : index
    %4 = vector.load %arg3[%c0_3, %c0_4] : memref<1x128xf32, #tpu.memory_space<vmem>>, vector<1x128xf32>
    %5 = vector.broadcast %4 : vector<1x128xf32> to vector<256x128xf32>
    %6 = arith.addf %3, %5 : vector<256x128xf32>
    %cst = arith.constant 0.000000e+00 : f32
    %7 = vector.broadcast %cst : f32 to vector<256x128xf32>
    %8 = arith.maximumf %6, %7 : vector<256x128xf32>
    %c0_5 = arith.constant 0 : index
    %c0_6 = arith.constant 0 : index
    %9 = vector.load %arg4[%c0_5, %c0_6] : memref<256x128xf32, #tpu.memory_space<vmem>>, vector<256x128xf32>
    tpu.vector_store %arg4[%c0_5, %c0_6], %8 {strides = array<i32>} : memref<256x128xf32, #tpu.memory_space<vmem>>, vector<256x128xf32>,
    return
  }
  func.func @transform_0(%arg0: i32) -> (i32, i32) {
    %c0_i32 = arith.constant 0 : i32
    %c0_i32_0 = arith.constant 0 : i32
    return %arg0, %c0_i32 : i32, i32
  }
  func.func @transform_1(%arg0: i32) -> (i32, i32) {
    %c0_i32 = arith.constant 0 : i32
    %c0_i32_0 = arith.constant 0 : i32
    %c0_i32_1 = arith.constant 0 : i32
    return %c0_i32, %c0_i32_0 : i32, i32
  }
  func.func @transform_2(%arg0: i32) -> (i32, i32) {
    %c0_i32 = arith.constant 0 : i32
    %c0_i32_0 = arith.constant 0 : i32
    %c0_i32_1 = arith.constant 0 : i32
    return %c0_i32, %c0_i32_0 : i32, i32
  }
  func.func @transform_3(%arg0: i32) -> (i32, i32) {
    %c0_i32 = arith.constant 0 : i32
    %c0_i32_0 = arith.constant 0 : i32
    return %arg0, %c0_i32 : i32, i32
  }
}

module attributes {stable_mosaic.version = 11 : i64} {
  func.func @_conv3d_stats_kernel(%arg0: i32, %arg1: i32, %arg2: memref<1x1x10x10x32xbf16, #tpu.memory_space<vmem>>, %arg3: memref<1x1x10x10x32xbf16, #tpu.memory_space<vmem>>, %arg4: memref<1x1x10x10x32xbf16, #tpu.memory_space<vmem>>, %arg5: memref<27x32x32xbf16, #tpu.memory_space<vmem>>, %arg6: memref<1x1x64x32xf32, #tpu.memory_space<vmem>>, %arg7: memref<1x1x2x32xf32, #tpu.memory_space<vmem>>) attributes {dimension_semantics = [#tpu.dimension_semantics<parallel>, #tpu.dimension_semantics<parallel>], iteration_bounds = array<i64: 2, 8>, scalar_prefetch = 0 : i64, scratch_operands = 0 : i64, tpu.core_type = #tpu.core_type<tc>, window_params = [{transform_indices = @transform_0, window_bounds = array<i64: 1, 1, 10, 10, 32>}, {transform_indices = @transform_1, window_bounds = array<i64: 1, 1, 10, 10, 32>}, {transform_indices = @transform_2, window_bounds = array<i64: 1, 1, 10, 10, 32>}, {pipeline_mode = #tpu.pipeline_mode<synchronous>, transform_indices = @transform_3, window_bounds = array<i64: 27, 32, 32>}, {transform_indices = @transform_4, window_bounds = array<i64: 1, 1, 64, 32>}, {transform_indices = @transform_5, window_bounds = array<i64: 1, 1, 2, 32>}]} {
    %cst = arith.constant 0.000000e+00 : f32
    %0 = vector.broadcast %cst : f32 to vector<64x32xf32>
    %c0 = arith.constant 0 : index
    %c0_0 = arith.constant 0 : index
    %c0_1 = arith.constant 0 : index
    %c0_2 = arith.constant 0 : index
    %c0_3 = arith.constant 0 : index
    %1 = vector.load %arg2[%c0, %c0_0, %c0_1, %c0_2, %c0_3] : memref<1x1x10x10x32xbf16, #tpu.memory_space<vmem>>, vector<1x1x10x10x32xbf16>
    %2 = vector.shape_cast %1 : vector<1x1x10x10x32xbf16> to vector<10x10x32xbf16>
    %c0_4 = arith.constant 0 : index
    %c0_5 = arith.constant 0 : index
    %c0_6 = arith.constant 0 : index
    %c0_7 = arith.constant 0 : index
    %c0_8 = arith.constant 0 : index
    %3 = vector.load %arg3[%c0_4, %c0_5, %c0_6, %c0_7, %c0_8] : memref<1x1x10x10x32xbf16, #tpu.memory_space<vmem>>, vector<1x1x10x10x32xbf16>
    %4 = vector.shape_cast %3 : vector<1x1x10x10x32xbf16> to vector<10x10x32xbf16>
    %c0_9 = arith.constant 0 : index
    %c0_10 = arith.constant 0 : index
    %c0_11 = arith.constant 0 : index
    %c0_12 = arith.constant 0 : index
    %c0_13 = arith.constant 0 : index
    %5 = vector.load %arg4[%c0_9, %c0_10, %c0_11, %c0_12, %c0_13] : memref<1x1x10x10x32xbf16, #tpu.memory_space<vmem>>, vector<1x1x10x10x32xbf16>
    %6 = vector.shape_cast %5 : vector<1x1x10x10x32xbf16> to vector<10x10x32xbf16>
    %7 = vector.extract_strided_slice %2 {offsets = [0, 0, 0], sizes = [8, 8, 32], strides = [1, 1, 1]} : vector<10x10x32xbf16> to vector<8x8x32xbf16>
    %8 = vector.shape_cast %7 : vector<8x8x32xbf16> to vector<64x32xbf16>
    %c0_14 = arith.constant 0 : index
    %c0_15 = arith.constant 0 : index
    %c0_16 = arith.constant 0 : index
    %9 = vector.load %arg5[%c0_14, %c0_15, %c0_16] : memref<27x32x32xbf16, #tpu.memory_space<vmem>>, vector<1x32x32xbf16>
    %10 = vector.shape_cast %9 : vector<1x32x32xbf16> to vector<32x32xbf16>
    %cst_17 = arith.constant dense<0.000000e+00> : vector<64x32xf32>
    %11 = tpu.matmul %8, %10, %cst_17 {dimension_numbers = #tpu.dot_dimension_numbers<[1], [0], [0], [1], [0, 0, 1, 1], [], []>} : vector<64x32xbf16>, vector<32x32xbf16>, vector<64x32xf32> -> vector<64x32xf32>
    %12 = arith.addf %0, %11 : vector<64x32xf32>
    %13 = vector.extract_strided_slice %2 {offsets = [0, 1, 0], sizes = [8, 8, 32], strides = [1, 1, 1]} : vector<10x10x32xbf16> to vector<8x8x32xbf16>
    %14 = vector.shape_cast %13 : vector<8x8x32xbf16> to vector<64x32xbf16>
    %c1 = arith.constant 1 : index
    %c0_18 = arith.constant 0 : index
    %c0_19 = arith.constant 0 : index
    %15 = vector.load %arg5[%c1, %c0_18, %c0_19] : memref<27x32x32xbf16, #tpu.memory_space<vmem>>, vector<1x32x32xbf16>
    %16 = vector.shape_cast %15 : vector<1x32x32xbf16> to vector<32x32xbf16>
    %cst_20 = arith.constant dense<0.000000e+00> : vector<64x32xf32>
    %17 = tpu.matmul %14, %16, %cst_20 {dimension_numbers = #tpu.dot_dimension_numbers<[1], [0], [0], [1], [0, 0, 1, 1], [], []>} : vector<64x32xbf16>, vector<32x32xbf16>, vector<64x32xf32> -> vector<64x32xf32>
    %18 = arith.addf %12, %17 : vector<64x32xf32>
    %19 = vector.extract_strided_slice %2 {offsets = [0, 2, 0], sizes = [8, 8, 32], strides = [1, 1, 1]} : vector<10x10x32xbf16> to vector<8x8x32xbf16>
    %20 = vector.shape_cast %19 : vector<8x8x32xbf16> to vector<64x32xbf16>
    %c2 = arith.constant 2 : index
    %c0_21 = arith.constant 0 : index
    %c0_22 = arith.constant 0 : index
    %21 = vector.load %arg5[%c2, %c0_21, %c0_22] : memref<27x32x32xbf16, #tpu.memory_space<vmem>>, vector<1x32x32xbf16>
    %22 = vector.shape_cast %21 : vector<1x32x32xbf16> to vector<32x32xbf16>
    %cst_23 = arith.constant dense<0.000000e+00> : vector<64x32xf32>
    %23 = tpu.matmul %20, %22, %cst_23 {dimension_numbers = #tpu.dot_dimension_numbers<[1], [0], [0], [1], [0, 0, 1, 1], [], []>} : vector<64x32xbf16>, vector<32x32xbf16>, vector<64x32xf32> -> vector<64x32xf32>
    %24 = arith.addf %18, %23 : vector<64x32xf32>
    %25 = vector.extract_strided_slice %2 {offsets = [1, 0, 0], sizes = [8, 8, 32], strides = [1, 1, 1]} : vector<10x10x32xbf16> to vector<8x8x32xbf16>
    %26 = vector.shape_cast %25 : vector<8x8x32xbf16> to vector<64x32xbf16>
    %c3 = arith.constant 3 : index
    %c0_24 = arith.constant 0 : index
    %c0_25 = arith.constant 0 : index
    %27 = vector.load %arg5[%c3, %c0_24, %c0_25] : memref<27x32x32xbf16, #tpu.memory_space<vmem>>, vector<1x32x32xbf16>
    %28 = vector.shape_cast %27 : vector<1x32x32xbf16> to vector<32x32xbf16>
    %cst_26 = arith.constant dense<0.000000e+00> : vector<64x32xf32>
    %29 = tpu.matmul %26, %28, %cst_26 {dimension_numbers = #tpu.dot_dimension_numbers<[1], [0], [0], [1], [0, 0, 1, 1], [], []>} : vector<64x32xbf16>, vector<32x32xbf16>, vector<64x32xf32> -> vector<64x32xf32>
    %30 = arith.addf %24, %29 : vector<64x32xf32>
    %31 = vector.extract_strided_slice %2 {offsets = [1, 1, 0], sizes = [8, 8, 32], strides = [1, 1, 1]} : vector<10x10x32xbf16> to vector<8x8x32xbf16>
    %32 = vector.shape_cast %31 : vector<8x8x32xbf16> to vector<64x32xbf16>
    %c4 = arith.constant 4 : index
    %c0_27 = arith.constant 0 : index
    %c0_28 = arith.constant 0 : index
    %33 = vector.load %arg5[%c4, %c0_27, %c0_28] : memref<27x32x32xbf16, #tpu.memory_space<vmem>>, vector<1x32x32xbf16>
    %34 = vector.shape_cast %33 : vector<1x32x32xbf16> to vector<32x32xbf16>
    %cst_29 = arith.constant dense<0.000000e+00> : vector<64x32xf32>
    %35 = tpu.matmul %32, %34, %cst_29 {dimension_numbers = #tpu.dot_dimension_numbers<[1], [0], [0], [1], [0, 0, 1, 1], [], []>} : vector<64x32xbf16>, vector<32x32xbf16>, vector<64x32xf32> -> vector<64x32xf32>
    %36 = arith.addf %30, %35 : vector<64x32xf32>
    %37 = vector.extract_strided_slice %2 {offsets = [1, 2, 0], sizes = [8, 8, 32], strides = [1, 1, 1]} : vector<10x10x32xbf16> to vector<8x8x32xbf16>
    %38 = vector.shape_cast %37 : vector<8x8x32xbf16> to vector<64x32xbf16>
    %c5 = arith.constant 5 : index
    %c0_30 = arith.constant 0 : index
    %c0_31 = arith.constant 0 : index
    %39 = vector.load %arg5[%c5, %c0_30, %c0_31] : memref<27x32x32xbf16, #tpu.memory_space<vmem>>, vector<1x32x32xbf16>
    %40 = vector.shape_cast %39 : vector<1x32x32xbf16> to vector<32x32xbf16>
    %cst_32 = arith.constant dense<0.000000e+00> : vector<64x32xf32>
    %41 = tpu.matmul %38, %40, %cst_32 {dimension_numbers = #tpu.dot_dimension_numbers<[1], [0], [0], [1], [0, 0, 1, 1], [], []>} : vector<64x32xbf16>, vector<32x32xbf16>, vector<64x32xf32> -> vector<64x32xf32>
    %42 = arith.addf %36, %41 : vector<64x32xf32>
    %43 = vector.extract_strided_slice %2 {offsets = [2, 0, 0], sizes = [8, 8, 32], strides = [1, 1, 1]} : vector<10x10x32xbf16> to vector<8x8x32xbf16>
    %44 = vector.shape_cast %43 : vector<8x8x32xbf16> to vector<64x32xbf16>
    %c6 = arith.constant 6 : index
    %c0_33 = arith.constant 0 : index
    %c0_34 = arith.constant 0 : index
    %45 = vector.load %arg5[%c6, %c0_33, %c0_34] : memref<27x32x32xbf16, #tpu.memory_space<vmem>>, vector<1x32x32xbf16>
    %46 = vector.shape_cast %45 : vector<1x32x32xbf16> to vector<32x32xbf16>
    %cst_35 = arith.constant dense<0.000000e+00> : vector<64x32xf32>
    %47 = tpu.matmul %44, %46, %cst_35 {dimension_numbers = #tpu.dot_dimension_numbers<[1], [0], [0], [1], [0, 0, 1, 1], [], []>} : vector<64x32xbf16>, vector<32x32xbf16>, vector<64x32xf32> -> vector<64x32xf32>
    %48 = arith.addf %42, %47 : vector<64x32xf32>
    %49 = vector.extract_strided_slice %2 {offsets = [2, 1, 0], sizes = [8, 8, 32], strides = [1, 1, 1]} : vector<10x10x32xbf16> to vector<8x8x32xbf16>
    %50 = vector.shape_cast %49 : vector<8x8x32xbf16> to vector<64x32xbf16>
    %c7 = arith.constant 7 : index
    %c0_36 = arith.constant 0 : index
    %c0_37 = arith.constant 0 : index
    %51 = vector.load %arg5[%c7, %c0_36, %c0_37] : memref<27x32x32xbf16, #tpu.memory_space<vmem>>, vector<1x32x32xbf16>
    %52 = vector.shape_cast %51 : vector<1x32x32xbf16> to vector<32x32xbf16>
    %cst_38 = arith.constant dense<0.000000e+00> : vector<64x32xf32>
    %53 = tpu.matmul %50, %52, %cst_38 {dimension_numbers = #tpu.dot_dimension_numbers<[1], [0], [0], [1], [0, 0, 1, 1], [], []>} : vector<64x32xbf16>, vector<32x32xbf16>, vector<64x32xf32> -> vector<64x32xf32>
    %54 = arith.addf %48, %53 : vector<64x32xf32>
    %55 = vector.extract_strided_slice %2 {offsets = [2, 2, 0], sizes = [8, 8, 32], strides = [1, 1, 1]} : vector<10x10x32xbf16> to vector<8x8x32xbf16>
    %56 = vector.shape_cast %55 : vector<8x8x32xbf16> to vector<64x32xbf16>
    %c8 = arith.constant 8 : index
    %c0_39 = arith.constant 0 : index
    %c0_40 = arith.constant 0 : index
    %57 = vector.load %arg5[%c8, %c0_39, %c0_40] : memref<27x32x32xbf16, #tpu.memory_space<vmem>>, vector<1x32x32xbf16>
    %58 = vector.shape_cast %57 : vector<1x32x32xbf16> to vector<32x32xbf16>
    %cst_41 = arith.constant dense<0.000000e+00> : vector<64x32xf32>
    %59 = tpu.matmul %56, %58, %cst_41 {dimension_numbers = #tpu.dot_dimension_numbers<[1], [0], [0], [1], [0, 0, 1, 1], [], []>} : vector<64x32xbf16>, vector<32x32xbf16>, vector<64x32xf32> -> vector<64x32xf32>
    %60 = arith.addf %54, %59 : vector<64x32xf32>
    %61 = vector.extract_strided_slice %4 {offsets = [0, 0, 0], sizes = [8, 8, 32], strides = [1, 1, 1]} : vector<10x10x32xbf16> to vector<8x8x32xbf16>
    %62 = vector.shape_cast %61 : vector<8x8x32xbf16> to vector<64x32xbf16>
    %c9 = arith.constant 9 : index
    %c0_42 = arith.constant 0 : index
    %c0_43 = arith.constant 0 : index
    %63 = vector.load %arg5[%c9, %c0_42, %c0_43] : memref<27x32x32xbf16, #tpu.memory_space<vmem>>, vector<1x32x32xbf16>
    %64 = vector.shape_cast %63 : vector<1x32x32xbf16> to vector<32x32xbf16>
    %cst_44 = arith.constant dense<0.000000e+00> : vector<64x32xf32>
    %65 = tpu.matmul %62, %64, %cst_44 {dimension_numbers = #tpu.dot_dimension_numbers<[1], [0], [0], [1], [0, 0, 1, 1], [], []>} : vector<64x32xbf16>, vector<32x32xbf16>, vector<64x32xf32> -> vector<64x32xf32>
    %66 = arith.addf %60, %65 : vector<64x32xf32>
    %67 = vector.extract_strided_slice %4 {offsets = [0, 1, 0], sizes = [8, 8, 32], strides = [1, 1, 1]} : vector<10x10x32xbf16> to vector<8x8x32xbf16>
    %68 = vector.shape_cast %67 : vector<8x8x32xbf16> to vector<64x32xbf16>
    %c10 = arith.constant 10 : index
    %c0_45 = arith.constant 0 : index
    %c0_46 = arith.constant 0 : index
    %69 = vector.load %arg5[%c10, %c0_45, %c0_46] : memref<27x32x32xbf16, #tpu.memory_space<vmem>>, vector<1x32x32xbf16>
    %70 = vector.shape_cast %69 : vector<1x32x32xbf16> to vector<32x32xbf16>
    %cst_47 = arith.constant dense<0.000000e+00> : vector<64x32xf32>
    %71 = tpu.matmul %68, %70, %cst_47 {dimension_numbers = #tpu.dot_dimension_numbers<[1], [0], [0], [1], [0, 0, 1, 1], [], []>} : vector<64x32xbf16>, vector<32x32xbf16>, vector<64x32xf32> -> vector<64x32xf32>
    %72 = arith.addf %66, %71 : vector<64x32xf32>
    %73 = vector.extract_strided_slice %4 {offsets = [0, 2, 0], sizes = [8, 8, 32], strides = [1, 1, 1]} : vector<10x10x32xbf16> to vector<8x8x32xbf16>
    %74 = vector.shape_cast %73 : vector<8x8x32xbf16> to vector<64x32xbf16>
    %c11 = arith.constant 11 : index
    %c0_48 = arith.constant 0 : index
    %c0_49 = arith.constant 0 : index
    %75 = vector.load %arg5[%c11, %c0_48, %c0_49] : memref<27x32x32xbf16, #tpu.memory_space<vmem>>, vector<1x32x32xbf16>
    %76 = vector.shape_cast %75 : vector<1x32x32xbf16> to vector<32x32xbf16>
    %cst_50 = arith.constant dense<0.000000e+00> : vector<64x32xf32>
    %77 = tpu.matmul %74, %76, %cst_50 {dimension_numbers = #tpu.dot_dimension_numbers<[1], [0], [0], [1], [0, 0, 1, 1], [], []>} : vector<64x32xbf16>, vector<32x32xbf16>, vector<64x32xf32> -> vector<64x32xf32>
    %78 = arith.addf %72, %77 : vector<64x32xf32>
    %79 = vector.extract_strided_slice %4 {offsets = [1, 0, 0], sizes = [8, 8, 32], strides = [1, 1, 1]} : vector<10x10x32xbf16> to vector<8x8x32xbf16>
    %80 = vector.shape_cast %79 : vector<8x8x32xbf16> to vector<64x32xbf16>
    %c12 = arith.constant 12 : index
    %c0_51 = arith.constant 0 : index
    %c0_52 = arith.constant 0 : index
    %81 = vector.load %arg5[%c12, %c0_51, %c0_52] : memref<27x32x32xbf16, #tpu.memory_space<vmem>>, vector<1x32x32xbf16>
    %82 = vector.shape_cast %81 : vector<1x32x32xbf16> to vector<32x32xbf16>
    %cst_53 = arith.constant dense<0.000000e+00> : vector<64x32xf32>
    %83 = tpu.matmul %80, %82, %cst_53 {dimension_numbers = #tpu.dot_dimension_numbers<[1], [0], [0], [1], [0, 0, 1, 1], [], []>} : vector<64x32xbf16>, vector<32x32xbf16>, vector<64x32xf32> -> vector<64x32xf32>
    %84 = arith.addf %78, %83 : vector<64x32xf32>
    %85 = vector.extract_strided_slice %4 {offsets = [1, 1, 0], sizes = [8, 8, 32], strides = [1, 1, 1]} : vector<10x10x32xbf16> to vector<8x8x32xbf16>
    %86 = vector.shape_cast %85 : vector<8x8x32xbf16> to vector<64x32xbf16>
    %c13 = arith.constant 13 : index
    %c0_54 = arith.constant 0 : index
    %c0_55 = arith.constant 0 : index
    %87 = vector.load %arg5[%c13, %c0_54, %c0_55] : memref<27x32x32xbf16, #tpu.memory_space<vmem>>, vector<1x32x32xbf16>
    %88 = vector.shape_cast %87 : vector<1x32x32xbf16> to vector<32x32xbf16>
    %cst_56 = arith.constant dense<0.000000e+00> : vector<64x32xf32>
    %89 = tpu.matmul %86, %88, %cst_56 {dimension_numbers = #tpu.dot_dimension_numbers<[1], [0], [0], [1], [0, 0, 1, 1], [], []>} : vector<64x32xbf16>, vector<32x32xbf16>, vector<64x32xf32> -> vector<64x32xf32>
    %90 = arith.addf %84, %89 : vector<64x32xf32>
    %91 = vector.extract_strided_slice %4 {offsets = [1, 2, 0], sizes = [8, 8, 32], strides = [1, 1, 1]} : vector<10x10x32xbf16> to vector<8x8x32xbf16>
    %92 = vector.shape_cast %91 : vector<8x8x32xbf16> to vector<64x32xbf16>
    %c14 = arith.constant 14 : index
    %c0_57 = arith.constant 0 : index
    %c0_58 = arith.constant 0 : index
    %93 = vector.load %arg5[%c14, %c0_57, %c0_58] : memref<27x32x32xbf16, #tpu.memory_space<vmem>>, vector<1x32x32xbf16>
    %94 = vector.shape_cast %93 : vector<1x32x32xbf16> to vector<32x32xbf16>
    %cst_59 = arith.constant dense<0.000000e+00> : vector<64x32xf32>
    %95 = tpu.matmul %92, %94, %cst_59 {dimension_numbers = #tpu.dot_dimension_numbers<[1], [0], [0], [1], [0, 0, 1, 1], [], []>} : vector<64x32xbf16>, vector<32x32xbf16>, vector<64x32xf32> -> vector<64x32xf32>
    %96 = arith.addf %90, %95 : vector<64x32xf32>
    %97 = vector.extract_strided_slice %4 {offsets = [2, 0, 0], sizes = [8, 8, 32], strides = [1, 1, 1]} : vector<10x10x32xbf16> to vector<8x8x32xbf16>
    %98 = vector.shape_cast %97 : vector<8x8x32xbf16> to vector<64x32xbf16>
    %c15 = arith.constant 15 : index
    %c0_60 = arith.constant 0 : index
    %c0_61 = arith.constant 0 : index
    %99 = vector.load %arg5[%c15, %c0_60, %c0_61] : memref<27x32x32xbf16, #tpu.memory_space<vmem>>, vector<1x32x32xbf16>
    %100 = vector.shape_cast %99 : vector<1x32x32xbf16> to vector<32x32xbf16>
    %cst_62 = arith.constant dense<0.000000e+00> : vector<64x32xf32>
    %101 = tpu.matmul %98, %100, %cst_62 {dimension_numbers = #tpu.dot_dimension_numbers<[1], [0], [0], [1], [0, 0, 1, 1], [], []>} : vector<64x32xbf16>, vector<32x32xbf16>, vector<64x32xf32> -> vector<64x32xf32>
    %102 = arith.addf %96, %101 : vector<64x32xf32>
    %103 = vector.extract_strided_slice %4 {offsets = [2, 1, 0], sizes = [8, 8, 32], strides = [1, 1, 1]} : vector<10x10x32xbf16> to vector<8x8x32xbf16>
    %104 = vector.shape_cast %103 : vector<8x8x32xbf16> to vector<64x32xbf16>
    %c16 = arith.constant 16 : index
    %c0_63 = arith.constant 0 : index
    %c0_64 = arith.constant 0 : index
    %105 = vector.load %arg5[%c16, %c0_63, %c0_64] : memref<27x32x32xbf16, #tpu.memory_space<vmem>>, vector<1x32x32xbf16>
    %106 = vector.shape_cast %105 : vector<1x32x32xbf16> to vector<32x32xbf16>
    %cst_65 = arith.constant dense<0.000000e+00> : vector<64x32xf32>
    %107 = tpu.matmul %104, %106, %cst_65 {dimension_numbers = #tpu.dot_dimension_numbers<[1], [0], [0], [1], [0, 0, 1, 1], [], []>} : vector<64x32xbf16>, vector<32x32xbf16>, vector<64x32xf32> -> vector<64x32xf32>
    %108 = arith.addf %102, %107 : vector<64x32xf32>
    %109 = vector.extract_strided_slice %4 {offsets = [2, 2, 0], sizes = [8, 8, 32], strides = [1, 1, 1]} : vector<10x10x32xbf16> to vector<8x8x32xbf16>
    %110 = vector.shape_cast %109 : vector<8x8x32xbf16> to vector<64x32xbf16>
    %c17 = arith.constant 17 : index
    %c0_66 = arith.constant 0 : index
    %c0_67 = arith.constant 0 : index
    %111 = vector.load %arg5[%c17, %c0_66, %c0_67] : memref<27x32x32xbf16, #tpu.memory_space<vmem>>, vector<1x32x32xbf16>
    %112 = vector.shape_cast %111 : vector<1x32x32xbf16> to vector<32x32xbf16>
    %cst_68 = arith.constant dense<0.000000e+00> : vector<64x32xf32>
    %113 = tpu.matmul %110, %112, %cst_68 {dimension_numbers = #tpu.dot_dimension_numbers<[1], [0], [0], [1], [0, 0, 1, 1], [], []>} : vector<64x32xbf16>, vector<32x32xbf16>, vector<64x32xf32> -> vector<64x32xf32>
    %114 = arith.addf %108, %113 : vector<64x32xf32>
    %115 = vector.extract_strided_slice %6 {offsets = [0, 0, 0], sizes = [8, 8, 32], strides = [1, 1, 1]} : vector<10x10x32xbf16> to vector<8x8x32xbf16>
    %116 = vector.shape_cast %115 : vector<8x8x32xbf16> to vector<64x32xbf16>
    %c18 = arith.constant 18 : index
    %c0_69 = arith.constant 0 : index
    %c0_70 = arith.constant 0 : index
    %117 = vector.load %arg5[%c18, %c0_69, %c0_70] : memref<27x32x32xbf16, #tpu.memory_space<vmem>>, vector<1x32x32xbf16>
    %118 = vector.shape_cast %117 : vector<1x32x32xbf16> to vector<32x32xbf16>
    %cst_71 = arith.constant dense<0.000000e+00> : vector<64x32xf32>
    %119 = tpu.matmul %116, %118, %cst_71 {dimension_numbers = #tpu.dot_dimension_numbers<[1], [0], [0], [1], [0, 0, 1, 1], [], []>} : vector<64x32xbf16>, vector<32x32xbf16>, vector<64x32xf32> -> vector<64x32xf32>
    %120 = arith.addf %114, %119 : vector<64x32xf32>
    %121 = vector.extract_strided_slice %6 {offsets = [0, 1, 0], sizes = [8, 8, 32], strides = [1, 1, 1]} : vector<10x10x32xbf16> to vector<8x8x32xbf16>
    %122 = vector.shape_cast %121 : vector<8x8x32xbf16> to vector<64x32xbf16>
    %c19 = arith.constant 19 : index
    %c0_72 = arith.constant 0 : index
    %c0_73 = arith.constant 0 : index
    %123 = vector.load %arg5[%c19, %c0_72, %c0_73] : memref<27x32x32xbf16, #tpu.memory_space<vmem>>, vector<1x32x32xbf16>
    %124 = vector.shape_cast %123 : vector<1x32x32xbf16> to vector<32x32xbf16>
    %cst_74 = arith.constant dense<0.000000e+00> : vector<64x32xf32>
    %125 = tpu.matmul %122, %124, %cst_74 {dimension_numbers = #tpu.dot_dimension_numbers<[1], [0], [0], [1], [0, 0, 1, 1], [], []>} : vector<64x32xbf16>, vector<32x32xbf16>, vector<64x32xf32> -> vector<64x32xf32>
    %126 = arith.addf %120, %125 : vector<64x32xf32>
    %127 = vector.extract_strided_slice %6 {offsets = [0, 2, 0], sizes = [8, 8, 32], strides = [1, 1, 1]} : vector<10x10x32xbf16> to vector<8x8x32xbf16>
    %128 = vector.shape_cast %127 : vector<8x8x32xbf16> to vector<64x32xbf16>
    %c20 = arith.constant 20 : index
    %c0_75 = arith.constant 0 : index
    %c0_76 = arith.constant 0 : index
    %129 = vector.load %arg5[%c20, %c0_75, %c0_76] : memref<27x32x32xbf16, #tpu.memory_space<vmem>>, vector<1x32x32xbf16>
    %130 = vector.shape_cast %129 : vector<1x32x32xbf16> to vector<32x32xbf16>
    %cst_77 = arith.constant dense<0.000000e+00> : vector<64x32xf32>
    %131 = tpu.matmul %128, %130, %cst_77 {dimension_numbers = #tpu.dot_dimension_numbers<[1], [0], [0], [1], [0, 0, 1, 1], [], []>} : vector<64x32xbf16>, vector<32x32xbf16>, vector<64x32xf32> -> vector<64x32xf32>
    %132 = arith.addf %126, %131 : vector<64x32xf32>
    %133 = vector.extract_strided_slice %6 {offsets = [1, 0, 0], sizes = [8, 8, 32], strides = [1, 1, 1]} : vector<10x10x32xbf16> to vector<8x8x32xbf16>
    %134 = vector.shape_cast %133 : vector<8x8x32xbf16> to vector<64x32xbf16>
    %c21 = arith.constant 21 : index
    %c0_78 = arith.constant 0 : index
    %c0_79 = arith.constant 0 : index
    %135 = vector.load %arg5[%c21, %c0_78, %c0_79] : memref<27x32x32xbf16, #tpu.memory_space<vmem>>, vector<1x32x32xbf16>
    %136 = vector.shape_cast %135 : vector<1x32x32xbf16> to vector<32x32xbf16>
    %cst_80 = arith.constant dense<0.000000e+00> : vector<64x32xf32>
    %137 = tpu.matmul %134, %136, %cst_80 {dimension_numbers = #tpu.dot_dimension_numbers<[1], [0], [0], [1], [0, 0, 1, 1], [], []>} : vector<64x32xbf16>, vector<32x32xbf16>, vector<64x32xf32> -> vector<64x32xf32>
    %138 = arith.addf %132, %137 : vector<64x32xf32>
    %139 = vector.extract_strided_slice %6 {offsets = [1, 1, 0], sizes = [8, 8, 32], strides = [1, 1, 1]} : vector<10x10x32xbf16> to vector<8x8x32xbf16>
    %140 = vector.shape_cast %139 : vector<8x8x32xbf16> to vector<64x32xbf16>
    %c22 = arith.constant 22 : index
    %c0_81 = arith.constant 0 : index
    %c0_82 = arith.constant 0 : index
    %141 = vector.load %arg5[%c22, %c0_81, %c0_82] : memref<27x32x32xbf16, #tpu.memory_space<vmem>>, vector<1x32x32xbf16>
    %142 = vector.shape_cast %141 : vector<1x32x32xbf16> to vector<32x32xbf16>
    %cst_83 = arith.constant dense<0.000000e+00> : vector<64x32xf32>
    %143 = tpu.matmul %140, %142, %cst_83 {dimension_numbers = #tpu.dot_dimension_numbers<[1], [0], [0], [1], [0, 0, 1, 1], [], []>} : vector<64x32xbf16>, vector<32x32xbf16>, vector<64x32xf32> -> vector<64x32xf32>
    %144 = arith.addf %138, %143 : vector<64x32xf32>
    %145 = vector.extract_strided_slice %6 {offsets = [1, 2, 0], sizes = [8, 8, 32], strides = [1, 1, 1]} : vector<10x10x32xbf16> to vector<8x8x32xbf16>
    %146 = vector.shape_cast %145 : vector<8x8x32xbf16> to vector<64x32xbf16>
    %c23 = arith.constant 23 : index
    %c0_84 = arith.constant 0 : index
    %c0_85 = arith.constant 0 : index
    %147 = vector.load %arg5[%c23, %c0_84, %c0_85] : memref<27x32x32xbf16, #tpu.memory_space<vmem>>, vector<1x32x32xbf16>
    %148 = vector.shape_cast %147 : vector<1x32x32xbf16> to vector<32x32xbf16>
    %cst_86 = arith.constant dense<0.000000e+00> : vector<64x32xf32>
    %149 = tpu.matmul %146, %148, %cst_86 {dimension_numbers = #tpu.dot_dimension_numbers<[1], [0], [0], [1], [0, 0, 1, 1], [], []>} : vector<64x32xbf16>, vector<32x32xbf16>, vector<64x32xf32> -> vector<64x32xf32>
    %150 = arith.addf %144, %149 : vector<64x32xf32>
    %151 = vector.extract_strided_slice %6 {offsets = [2, 0, 0], sizes = [8, 8, 32], strides = [1, 1, 1]} : vector<10x10x32xbf16> to vector<8x8x32xbf16>
    %152 = vector.shape_cast %151 : vector<8x8x32xbf16> to vector<64x32xbf16>
    %c24 = arith.constant 24 : index
    %c0_87 = arith.constant 0 : index
    %c0_88 = arith.constant 0 : index
    %153 = vector.load %arg5[%c24, %c0_87, %c0_88] : memref<27x32x32xbf16, #tpu.memory_space<vmem>>, vector<1x32x32xbf16>
    %154 = vector.shape_cast %153 : vector<1x32x32xbf16> to vector<32x32xbf16>
    %cst_89 = arith.constant dense<0.000000e+00> : vector<64x32xf32>
    %155 = tpu.matmul %152, %154, %cst_89 {dimension_numbers = #tpu.dot_dimension_numbers<[1], [0], [0], [1], [0, 0, 1, 1], [], []>} : vector<64x32xbf16>, vector<32x32xbf16>, vector<64x32xf32> -> vector<64x32xf32>
    %156 = arith.addf %150, %155 : vector<64x32xf32>
    %157 = vector.extract_strided_slice %6 {offsets = [2, 1, 0], sizes = [8, 8, 32], strides = [1, 1, 1]} : vector<10x10x32xbf16> to vector<8x8x32xbf16>
    %158 = vector.shape_cast %157 : vector<8x8x32xbf16> to vector<64x32xbf16>
    %c25 = arith.constant 25 : index
    %c0_90 = arith.constant 0 : index
    %c0_91 = arith.constant 0 : index
    %159 = vector.load %arg5[%c25, %c0_90, %c0_91] : memref<27x32x32xbf16, #tpu.memory_space<vmem>>, vector<1x32x32xbf16>
    %160 = vector.shape_cast %159 : vector<1x32x32xbf16> to vector<32x32xbf16>
    %cst_92 = arith.constant dense<0.000000e+00> : vector<64x32xf32>
    %161 = tpu.matmul %158, %160, %cst_92 {dimension_numbers = #tpu.dot_dimension_numbers<[1], [0], [0], [1], [0, 0, 1, 1], [], []>} : vector<64x32xbf16>, vector<32x32xbf16>, vector<64x32xf32> -> vector<64x32xf32>
    %162 = arith.addf %156, %161 : vector<64x32xf32>
    %163 = vector.extract_strided_slice %6 {offsets = [2, 2, 0], sizes = [8, 8, 32], strides = [1, 1, 1]} : vector<10x10x32xbf16> to vector<8x8x32xbf16>
    %164 = vector.shape_cast %163 : vector<8x8x32xbf16> to vector<64x32xbf16>
    %c26 = arith.constant 26 : index
    %c0_93 = arith.constant 0 : index
    %c0_94 = arith.constant 0 : index
    %165 = vector.load %arg5[%c26, %c0_93, %c0_94] : memref<27x32x32xbf16, #tpu.memory_space<vmem>>, vector<1x32x32xbf16>
    %166 = vector.shape_cast %165 : vector<1x32x32xbf16> to vector<32x32xbf16>
    %cst_95 = arith.constant dense<0.000000e+00> : vector<64x32xf32>
    %167 = tpu.matmul %164, %166, %cst_95 {dimension_numbers = #tpu.dot_dimension_numbers<[1], [0], [0], [1], [0, 0, 1, 1], [], []>} : vector<64x32xbf16>, vector<32x32xbf16>, vector<64x32xf32> -> vector<64x32xf32>
    %168 = arith.addf %162, %167 : vector<64x32xf32>
    %c0_96 = arith.constant 0 : index
    %c0_97 = arith.constant 0 : index
    %c0_98 = arith.constant 0 : index
    %c0_99 = arith.constant 0 : index
    %169 = vector.load %arg6[%c0_96, %c0_97, %c0_98, %c0_99] : memref<1x1x64x32xf32, #tpu.memory_space<vmem>>, vector<1x1x64x32xf32>
    %170 = vector.shape_cast %169 : vector<1x1x64x32xf32> to vector<64x32xf32>
    %171 = vector.shape_cast %168 : vector<64x32xf32> to vector<1x1x64x32xf32>
    tpu.vector_store %arg6[%c0_96, %c0_97, %c0_98, %c0_99], %171 {strides = array<i32>} : memref<1x1x64x32xf32, #tpu.memory_space<vmem>>, vector<1x1x64x32xf32>,
    %cst_100 = arith.constant dense<0.000000e+00> : vector<32xf32>
    %172 = vector.multi_reduction <add>, %168, %cst_100 [0] : vector<64x32xf32> to vector<32xf32>
    %173 = vector.shape_cast %172 : vector<32xf32> to vector<1x32xf32>
    %174 = arith.mulf %168, %168 : vector<64x32xf32>
    %cst_101 = arith.constant dense<0.000000e+00> : vector<32xf32>
    %175 = vector.multi_reduction <add>, %174, %cst_101 [0] : vector<64x32xf32> to vector<32xf32>
    %176 = vector.shape_cast %175 : vector<32xf32> to vector<1x32xf32>
    %177 = tpu.concatenate %173, %176 in 0 : vector<1x32xf32>, vector<1x32xf32> -> vector<2x32xf32>
    %c0_102 = arith.constant 0 : index
    %c0_103 = arith.constant 0 : index
    %c0_104 = arith.constant 0 : index
    %c0_105 = arith.constant 0 : index
    %178 = vector.load %arg7[%c0_102, %c0_103, %c0_104, %c0_105] : memref<1x1x2x32xf32, #tpu.memory_space<vmem>>, vector<1x1x2x32xf32>
    %179 = vector.shape_cast %178 : vector<1x1x2x32xf32> to vector<2x32xf32>
    %180 = vector.shape_cast %177 : vector<2x32xf32> to vector<1x1x2x32xf32>
    tpu.vector_store %arg7[%c0_102, %c0_103, %c0_104, %c0_105], %180 {strides = array<i32>} : memref<1x1x2x32xf32, #tpu.memory_space<vmem>>, vector<1x1x2x32xf32>,
    return
  }
  func.func @transform_0(%arg0: i32, %arg1: i32) -> (i32, i32, i32, i32, i32) {
    %c0_i32 = arith.constant 0 : i32
    %c0_i32_0 = arith.constant 0 : i32
    %c0_i32_1 = arith.constant 0 : i32
    %c0_i32_2 = arith.constant 0 : i32
    return %arg0, %arg1, %c0_i32, %c0_i32_0, %c0_i32_1 : i32, i32, i32, i32, i32
  }
  func.func @transform_1(%arg0: i32, %arg1: i32) -> (i32, i32, i32, i32, i32) {
    %c1_i32 = arith.constant 1 : i32
    %0 = arith.addi %arg1, %c1_i32 : i32
    %c0_i32 = arith.constant 0 : i32
    %c0_i32_0 = arith.constant 0 : i32
    %c0_i32_1 = arith.constant 0 : i32
    %c0_i32_2 = arith.constant 0 : i32
    return %arg0, %0, %c0_i32, %c0_i32_0, %c0_i32_1 : i32, i32, i32, i32, i32
  }
  func.func @transform_2(%arg0: i32, %arg1: i32) -> (i32, i32, i32, i32, i32) {
    %c2_i32 = arith.constant 2 : i32
    %0 = arith.addi %arg1, %c2_i32 : i32
    %c0_i32 = arith.constant 0 : i32
    %c0_i32_0 = arith.constant 0 : i32
    %c0_i32_1 = arith.constant 0 : i32
    %c0_i32_2 = arith.constant 0 : i32
    return %arg0, %0, %c0_i32, %c0_i32_0, %c0_i32_1 : i32, i32, i32, i32, i32
  }
  func.func @transform_3(%arg0: i32, %arg1: i32) -> (i32, i32, i32) {
    %c0_i32 = arith.constant 0 : i32
    %c0_i32_0 = arith.constant 0 : i32
    %c0_i32_1 = arith.constant 0 : i32
    %c0_i32_2 = arith.constant 0 : i32
    return %c0_i32, %c0_i32_0, %c0_i32_1 : i32, i32, i32
  }
  func.func @transform_4(%arg0: i32, %arg1: i32) -> (i32, i32, i32, i32) {
    %c0_i32 = arith.constant 0 : i32
    %c0_i32_0 = arith.constant 0 : i32
    %c0_i32_1 = arith.constant 0 : i32
    return %arg0, %arg1, %c0_i32, %c0_i32_0 : i32, i32, i32, i32
  }
  func.func @transform_5(%arg0: i32, %arg1: i32) -> (i32, i32, i32, i32) {
    %c0_i32 = arith.constant 0 : i32
    %c0_i32_0 = arith.constant 0 : i32
    %c0_i32_1 = arith.constant 0 : i32
    return %arg0, %arg1, %c0_i32, %c0_i32_0 : i32, i32, i32, i32
  }
}

module attributes {stable_mosaic.version = 11 : i64} {
  func.func @_bn_relu_kernel(%arg0: i32, %arg1: memref<256x128xf32, #tpu.memory_space<vmem>>, %arg2: memref<1x128xf32, #tpu.memory_space<vmem>>, %arg3: memref<1x128xf32, #tpu.memory_space<vmem>>, %arg4: memref<256x128xf32, #tpu.memory_space<vmem>>, %arg5: memref<256x128xf32, #tpu.memory_space<vmem>>) attributes {dimension_semantics = [#tpu.dimension_semantics<parallel>], iteration_bounds = array<i64: 1>, scalar_prefetch = 0 : i64, scratch_operands = 0 : i64, tpu.core_type = #tpu.core_type<tc>, window_params = [{transform_indices = @transform_0, window_bounds = array<i64: 256, 128>}, {pipeline_mode = #tpu.pipeline_mode<synchronous>, transform_indices = @transform_1, window_bounds = array<i64: 1, 128>}, {pipeline_mode = #tpu.pipeline_mode<synchronous>, transform_indices = @transform_2, window_bounds = array<i64: 1, 128>}, {transform_indices = @transform_3, window_bounds = array<i64: 256, 128>}, {transform_indices = @transform_4, window_bounds = array<i64: 256, 128>}]} {
    %c0 = arith.constant 0 : index
    %c0_0 = arith.constant 0 : index
    %0 = vector.load %arg1[%c0, %c0_0] : memref<256x128xf32, #tpu.memory_space<vmem>>, vector<256x128xf32>
    %c0_1 = arith.constant 0 : index
    %c0_2 = arith.constant 0 : index
    %1 = vector.load %arg2[%c0_1, %c0_2] : memref<1x128xf32, #tpu.memory_space<vmem>>, vector<1x128xf32>
    %2 = vector.broadcast %1 : vector<1x128xf32> to vector<256x128xf32>
    %3 = arith.mulf %0, %2 : vector<256x128xf32>
    %c0_3 = arith.constant 0 : index
    %c0_4 = arith.constant 0 : index
    %4 = vector.load %arg3[%c0_3, %c0_4] : memref<1x128xf32, #tpu.memory_space<vmem>>, vector<1x128xf32>
    %5 = vector.broadcast %4 : vector<1x128xf32> to vector<256x128xf32>
    %6 = arith.addf %3, %5 : vector<256x128xf32>
    %cst = arith.constant 0.000000e+00 : f32
    %7 = vector.broadcast %cst : f32 to vector<256x128xf32>
    %8 = arith.maximumf %6, %7 : vector<256x128xf32>
    %c0_5 = arith.constant 0 : index
    %c0_6 = arith.constant 0 : index
    %9 = vector.load %arg4[%c0_5, %c0_6] : memref<256x128xf32, #tpu.memory_space<vmem>>, vector<256x128xf32>
    %10 = arith.addf %8, %9 : vector<256x128xf32>
    %c0_7 = arith.constant 0 : index
    %c0_8 = arith.constant 0 : index
    %11 = vector.load %arg5[%c0_7, %c0_8] : memref<256x128xf32, #tpu.memory_space<vmem>>, vector<256x128xf32>
    tpu.vector_store %arg5[%c0_7, %c0_8], %10 {strides = array<i32>} : memref<256x128xf32, #tpu.memory_space<vmem>>, vector<256x128xf32>,
    return
  }
  func.func @transform_0(%arg0: i32) -> (i32, i32) {
    %c0_i32 = arith.constant 0 : i32
    %c0_i32_0 = arith.constant 0 : i32
    return %arg0, %c0_i32 : i32, i32
  }
  func.func @transform_1(%arg0: i32) -> (i32, i32) {
    %c0_i32 = arith.constant 0 : i32
    %c0_i32_0 = arith.constant 0 : i32
    %c0_i32_1 = arith.constant 0 : i32
    return %c0_i32, %c0_i32_0 : i32, i32
  }
  func.func @transform_2(%arg0: i32) -> (i32, i32) {
    %c0_i32 = arith.constant 0 : i32
    %c0_i32_0 = arith.constant 0 : i32
    %c0_i32_1 = arith.constant 0 : i32
    return %c0_i32, %c0_i32_0 : i32, i32
  }
  func.func @transform_3(%arg0: i32) -> (i32, i32) {
    %c0_i32 = arith.constant 0 : i32
    %c0_i32_0 = arith.constant 0 : i32
    return %arg0, %c0_i32 : i32, i32
  }
  func.func @transform_4(%arg0: i32) -> (i32, i32) {
    %c0_i32 = arith.constant 0 : i32
    %c0_i32_0 = arith.constant 0 : i32
    return %arg0, %c0_i32 : i32, i32
  }
}

</mosaic_0001>

<bundles_post_ra>
// kernel: tile.23
= control target key start
LH: loop header
LB: loop body
LE: loop exit
PB: predicated region body
PF: predicated region fallthrough
CT: control target
= control target key end

     0   :  { %s22_s0 = inlined_call_operand.vmem [shape: f32[32], index: 0, kind: input, shape index: {}]   ;;  %s23_s1 = inlined_call_operand.vmem [shape: f32[4,32], index: 1, kind: output, shape index: {}]  }
   0x1   :  { %v4_v0 = vld [vmem:[%s22_s0] ss:$0 sm:$0xff] }
   0x2   :  { %5 = vst [vmem:[%s23_s1] sm:$0xf] %v4_v0 }

// kernel: tile.24
= control target key start
LH: loop header
LB: loop body
LE: loop exit
PB: predicated region body
PF: predicated region fallthrough
CT: control target
= control target key end

     0   :  { %vm7_vm0 = vcmask 261120   ;;  %s37_s8 = smov 32   ;;  %s38_s9 = smov 64   ;;  %vm13_vm1 = vcmask 1048320   ;;  %vm19_vm2 = vcmask 785920   ;;  %vm25_vm3 = vcmask 523520   ;;  %s55_s0 = inlined_call_operand.vmem [shape: f32[4,32], index: 0, kind: input, shape index: {}]   ;;  %s56_s1 = inlined_call_operand.vmem [shape: f32[1,128], index: 1, kind: output, shape index: {}]  }
   0x1   :  { %v4_v0 = vld [vmem:[%s55_s0] sm:$0xf]  ;;  %s36_s0 = smov 96  }
   0x2   :  { %5 = vst [vmem:[#allocation1] sm:$0xf] %v4_v0 }
   0x9   :  { %v10_v1 = vld [vmem:[#allocation1 + $0x3] sm:$0x1]   ;;  %v22_v2 = vld [vmem:[#allocation1 + $0x1] sm:$0x1]   ;;  %v6_v3 = vld [vmem:[#allocation1] sm:$0x1]  }
   0xa   :  { %11 = vrot.lane.b32.xlu0 %v10_v1, %s36_s0  ;;  %23 = vrot.lane.b32.xlu1 %v22_v2, %s37_s8  ;;  %v16_v4 = vld [vmem:[#allocation1 + $0x2] sm:$0x1]   ;;  %8 = vst.msk [vmem:[#allocation0] sm:$0x1] %vm7_vm0, %v6_v3  }
   0xe   :  { %17 = vrot.lane.b32.xlu0 %v16_v4, %s38_s9 }
  0x7c   :  { %v12_v5 = vpop.permute.xlu0 %11   ;;  %v24_v6 = vpop.permute.xlu1 %23  }
  0x7d   :  { %14 = vst.msk [vmem:[#allocation0] sm:$0x1] %vm13_vm1, %v12_v5  }
  0x80   :  { %v18_v7 = vpop.permute.xlu0 %17  }
  0x81   :  { %20 = vst.msk [vmem:[#allocation0] sm:$0x1] %vm19_vm2, %v18_v7  }
  0x82   :  { %26 = vst.msk [vmem:[#allocation0] sm:$0x1] %vm25_vm3, %v24_v6  }
  0x89   :  { %v30_v8 = vld [vmem:[#allocation0] sm:$0x1] }
  0x8a   :  { %32 = vst [vmem:[%s56_s1] sm:$0x1] %v30_v8 }

// kernel: resblock_forward.5
= control target key start
LH: loop header
LB: loop body
LE: loop exit
PB: predicated region body
PF: predicated region fallthrough
CT: control target
= control target key end

     0   :  { %s480_s0 = inlined_call_operand.vmem [shape: f32[256,128], index: 0, kind: input, shape index: {}]   ;;  %s481_s1 = inlined_call_operand.vmem [shape: f32[1,128], index: 1, kind: input, shape index: {}]   ;;  %s482_s2 = inlined_call_operand.vmem [shape: f32[1,128], index: 2, kind: input, shape index: {}]   ;;  %s483_s3 = inlined_call_operand.vmem [shape: f32[256,128], index: 3, kind: output, shape index: {}]  }
   0x1   :  { %v14_v0 = vld [vmem:[%s480_s0] sm:$0xff]  ;;  %v15_v4 = vld [vmem:[%s480_s0 + $0x8] sm:$0xff]  ;;  %v16_v5 = vld [vmem:[%s480_s0 + $0x10] sm:$0xff] }
   0x2   :  { %v220_v1 = vld [vmem:[%s481_s1] ss:$0 sm:$0xff]  ;;  %v17_v6 = vld [vmem:[%s480_s0 + $0x18] sm:$0xff]  ;;  %v19_v11 = vld [vmem:[%s480_s0 + $0x28] sm:$0xff] }
   0x3   :  { %v225_v2 = vld [vmem:[%s482_s2] ss:$0 sm:$0xff]  ;;  %v53_v3 = vmul.f32 %v220_v1, %v14_v0  ;;  %v54_v7 = vmul.f32 %v220_v1, %v15_v4  ;;  %v55_v8 = vmul.f32 %v220_v1, %v16_v5  ;;  %v56_v9 = vmul.f32 %v220_v1, %v17_v6  ;;  %v20_v12 = vld [vmem:[%s480_s0 + $0x30] sm:$0xff]  ;;  %v21_v17 = vld [vmem:[%s480_s0 + $0x38] sm:$0xff] }
   0x4   :  { %v18_v10 = vld [vmem:[%s480_s0 + $0x20] sm:$0xff]  ;;  %v58_v15 = vmul.f32 %v220_v1, %v19_v11  ;;  %v59_v16 = vmul.f32 %v220_v1, %v20_v12  ;;  %v60_v21 = vmul.f32 %v220_v1, %v21_v17  ;;  %v23_v27 = vld [vmem:[%s480_s0 + $0x48] sm:$0xff]  ;;  %v24_v28 = vld [vmem:[%s480_s0 + $0x50] sm:$0xff] }
   0x5   :  { %v92_v13 = vadd.f32 %v225_v2, %v53_v3  ;;  %v57_v14 = vmul.f32 %v220_v1, %v18_v10  ;;  %v93_v18 = vadd.f32 %v225_v2, %v54_v7  ;;  %v94_v19 = vadd.f32 %v225_v2, %v55_v8  ;;  %v22_v22 = vld [vmem:[%s480_s0 + $0x40] sm:$0xff]  ;;  %v25_v29 = vld [vmem:[%s480_s0 + $0x58] sm:$0xff]  ;;  %v27_v35 = vld [vmem:[%s480_s0 + $0x68] sm:$0xff] }
   0x6   :  { %v95_v20 = vadd.f32 %v225_v2, %v56_v9  ;;  %v97_v25 = vadd.f32 %v225_v2, %v58_v15  ;;  %v98_v26 = vadd.f32 %v225_v2, %v59_v16  ;;  %v99_v33 = vadd.f32 %v225_v2, %v60_v21  ;;  %v26_v34 = vld [vmem:[%s480_s0 + $0x60] sm:$0xff]  ;;  %v28_v36 = vld [vmem:[%s480_s0 + $0x70] sm:$0xff]  ;;  %v29_v41 = vld [vmem:[%s480_s0 + $0x78] sm:$0xff] }
   0x7   :  { %v124_v23 = vmax.f32 %v92_v13, 0.0  ;;  %v96_v24 = vadd.f32 %v225_v2, %v57_v14  ;;  %v125_v30 = vmax.f32 %v93_v18, 0.0  ;;  %v126_v31 = vmax.f32 %v94_v19, 0.0  ;;  %v30_v54 = vld [vmem:[%s480_s0 + $0x80] sm:$0xff]  ;;  %v31_v59 = vld [vmem:[%s480_s0 + $0x88] sm:$0xff]  ;;  %v32_v60 = vld [vmem:[%s480_s0 + $0x90] sm:$0xff] }
   0x8   :  { %v127_v32 = vmax.f32 %v95_v20, 0.0  ;;  %v129_v38 = vmax.f32 %v97_v25, 0.0  ;;  %v130_v39 = vmax.f32 %v98_v26, 0.0  ;;  %v61_v40 = vmul.f32 %v220_v1, %v22_v22  ;;  %v33_v61 = vld [vmem:[%s480_s0 + $0x98] sm:$0xff]  ;;  %v34_v4 = vld [vmem:[%s480_s0 + $0xa0] sm:$0xff]  ;;  %v35_v5 = vld [vmem:[%s480_s0 + $0xa8] sm:$0xff] }
   0x9   :  { %156 = vst [vmem:[%s483_s3] sm:$0xff] %v124_v23  ;;  %v128_v37 = vmax.f32 %v96_v24, 0.0  ;;  %157 = vst [vmem:[%s483_s3 + $0x8] sm:$0xff] %v125_v30  ;;  %v131_v42 = vmax.f32 %v99_v33, 0.0  ;;  %v62_v43 = vmul.f32 %v220_v1, %v23_v27  ;;  %v63_v44 = vmul.f32 %v220_v1, %v24_v28  ;;  %v36_v6 = vld [vmem:[%s480_s0 + $0xb0] sm:$0xff]  ;;  %v37_v11 = vld [vmem:[%s480_s0 + $0xb8] sm:$0xff] }
   0xa   :  { %158 = vst [vmem:[%s483_s3 + $0x10] sm:$0xff] %v126_v31  ;;  %159 = vst [vmem:[%s483_s3 + $0x18] sm:$0xff] %v127_v32  ;;  %v64_v45 = vmul.f32 %v220_v1, %v25_v29  ;;  %v100_v46 = vadd.f32 %v225_v2, %v61_v40  ;;  %v65_v47 = vmul.f32 %v220_v1, %v26_v34  ;;  %v38_v24 = vld [vmem:[%s480_s0 + $0xc0] sm:$0xff]  ;;  %v39_v29 = vld [vmem:[%s480_s0 + $0xc8] sm:$0xff] }
   0xb   :  { %160 = vst [vmem:[%s483_s3 + $0x20] sm:$0xff] %v128_v37  ;;  %161 = vst [vmem:[%s483_s3 + $0x28] sm:$0xff] %v129_v38  ;;  %v66_v48 = vmul.f32 %v220_v1, %v27_v35  ;;  %v67_v49 = vmul.f32 %v220_v1, %v28_v36  ;;  %v101_v50 = vadd.f32 %v225_v2, %v62_v43  ;;  %v40_v30 = vld [vmem:[%s480_s0 + $0xd0] sm:$0xff]  ;;  %v41_v31 = vld [vmem:[%s480_s0 + $0xd8] sm:$0xff] }
   0xc   :  { %162 = vst [vmem:[%s483_s3 + $0x30] sm:$0xff] %v130_v39  ;;  %163 = vst [vmem:[%s483_s3 + $0x38] sm:$0xff] %v131_v42  ;;  %v102_v51 = vadd.f32 %v225_v2, %v63_v44  ;;  %v103_v52 = vadd.f32 %v225_v2, %v64_v45  ;;  %v68_v53 = vmul.f32 %v220_v1, %v29_v41  ;;  %v132_v55 = vmax.f32 %v100_v46, 0.0  ;;  %v42_v36 = vld [vmem:[%s480_s0 + $0xe0] sm:$0xff]  ;;  %v43_v37 = vld [vmem:[%s480_s0 + $0xe8] sm:$0xff] }
   0xd   :  { %v104_v56 = vadd.f32 %v225_v2, %v65_v47  ;;  %v105_v57 = vadd.f32 %v225_v2, %v66_v48  ;;  %v106_v58 = vadd.f32 %v225_v2, %v67_v49  ;;  %v133_v62 = vmax.f32 %v101_v50, 0.0  ;;  %v44_v38 = vld [vmem:[%s480_s0 + $0xf0] sm:$0xff]  ;;  %v45_v43 = vld [vmem:[%s480_s0 + $0xf8] sm:$0xff] }
   0xe   :  { %v134_v63 = vmax.f32 %v102_v51, 0.0  ;;  %v135_v0 = vmax.f32 %v103_v52, 0.0  ;;  %v107_v3 = vadd.f32 %v225_v2, %v68_v53  ;;  %164 = vst [vmem:[%s483_s3 + $0x40] sm:$0xff] %v132_v55  ;;  %v69_v10 = vmul.f32 %v220_v1, %v30_v54 }
   0xf   :  { %v136_v7 = vmax.f32 %v104_v56, 0.0  ;;  %v137_v8 = vmax.f32 %v105_v57, 0.0  ;;  %v138_v9 = vmax.f32 %v106_v58, 0.0  ;;  %165 = vst [vmem:[%s483_s3 + $0x48] sm:$0xff] %v133_v62  ;;  %v70_v13 = vmul.f32 %v220_v1, %v31_v59 }
  0x10   :  { %166 = vst [vmem:[%s483_s3 + $0x50] sm:$0xff] %v134_v63  ;;  %167 = vst [vmem:[%s483_s3 + $0x58] sm:$0xff] %v135_v0  ;;  %v139_v12 = vmax.f32 %v107_v3, 0.0  ;;  %v71_v14 = vmul.f32 %v220_v1, %v32_v60  ;;  %v72_v15 = vmul.f32 %v220_v1, %v33_v61  ;;  %v108_v16 = vadd.f32 %v225_v2, %v69_v10 }
  0x11   :  { %168 = vst [vmem:[%s483_s3 + $0x60] sm:$0xff] %v136_v7  ;;  %169 = vst [vmem:[%s483_s3 + $0x68] sm:$0xff] %v137_v8  ;;  %v73_v17 = vmul.f32 %v220_v1, %v34_v4  ;;  %v74_v18 = vmul.f32 %v220_v1, %v35_v5  ;;  %v75_v19 = vmul.f32 %v220_v1, %v36_v6 }
  0x12   :  { %170 = vst [vmem:[%s483_s3 + $0x70] sm:$0xff] %v138_v9  ;;  %171 = vst [vmem:[%s483_s3 + $0x78] sm:$0xff] %v139_v12  ;;  %v109_v20 = vadd.f32 %v225_v2, %v70_v13  ;;  %v110_v21 = vadd.f32 %v225_v2, %v71_v14  ;;  %v111_v22 = vadd.f32 %v225_v2, %v72_v15  ;;  %v140_v25 = vmax.f32 %v108_v16, 0.0 }
  0x13   :  { %v76_v23 = vmul.f32 %v220_v1, %v37_v11  ;;  %v112_v26 = vadd.f32 %v225_v2, %v73_v17  ;;  %v113_v27 = vadd.f32 %v225_v2, %v74_v18  ;;  %v114_v28 = vadd.f32 %v225_v2, %v75_v19 }
  0x14   :  { %v141_v32 = vmax.f32 %v109_v20, 0.0  ;;  %v142_v33 = vmax.f32 %v110_v21, 0.0  ;;  %v143_v34 = vmax.f32 %v111_v22, 0.0  ;;  %172 = vst [vmem:[%s483_s3 + $0x80] sm:$0xff] %v140_v25  ;;  %v77_v42 = vmul.f32 %v220_v1, %v38_v24 }
  0x15   :  { %v115_v35 = vadd.f32 %v225_v2, %v76_v23  ;;  %v144_v39 = vmax.f32 %v112_v26, 0.0  ;;  %v145_v40 = vmax.f32 %v113_v27, 0.0  ;;  %v146_v41 = vmax.f32 %v114_v28, 0.0 }
  0x16   :  { %173 = vst [vmem:[%s483_s3 + $0x88] sm:$0xff] %v141_v32  ;;  %174 = vst [vmem:[%s483_s3 + $0x90] sm:$0xff] %v142_v33  ;;  %v78_v45 = vmul.f32 %v220_v1, %v39_v29  ;;  %v79_v46 = vmul.f32 %v220_v1, %v40_v30  ;;  %v80_v47 = vmul.f32 %v220_v1, %v41_v31 }
  0x17   :  { %175 = vst [vmem:[%s483_s3 + $0x98] sm:$0xff] %v143_v34  ;;  %v147_v44 = vmax.f32 %v115_v35, 0.0  ;;  %176 = vst [vmem:[%s483_s3 + $0xa0] sm:$0xff] %v144_v39  ;;  %v116_v48 = vadd.f32 %v225_v2, %v77_v42  ;;  %v81_v49 = vmul.f32 %v220_v1, %v42_v36  ;;  %v82_v50 = vmul.f32 %v220_v1, %v43_v37 }
  0x18   :  { %177 = vst [vmem:[%s483_s3 + $0xa8] sm:$0xff] %v145_v40  ;;  %178 = vst [vmem:[%s483_s3 + $0xb0] sm:$0xff] %v146_v41  ;;  %v83_v51 = vmul.f32 %v220_v1, %v44_v38  ;;  %v117_v52 = vadd.f32 %v225_v2, %v78_v45  ;;  %v118_v53 = vadd.f32 %v225_v2, %v79_v46 }
  0x19   :  { %179 = vst [vmem:[%s483_s3 + $0xb8] sm:$0xff] %v147_v44  ;;  %v119_v54 = vadd.f32 %v225_v2, %v80_v47  ;;  %v84_v55 = vmul.f32 %v220_v1, %v45_v43  ;;  %v148_v56 = vmax.f32 %v116_v48, 0.0  ;;  %v120_v57 = vadd.f32 %v225_v2, %v81_v49 }
  0x1a   :  { %v121_v58 = vadd.f32 %v225_v2, %v82_v50  ;;  %v122_v59 = vadd.f32 %v225_v2, %v83_v51  ;;  %v149_v60 = vmax.f32 %v117_v52, 0.0  ;;  %v150_v61 = vmax.f32 %v118_v53, 0.0 }
  0x1b   :  { %v151_v62 = vmax.f32 %v119_v54, 0.0  ;;  %v123_v63 = vadd.f32 %v225_v2, %v84_v55  ;;  %180 = vst [vmem:[%s483_s3 + $0xc0] sm:$0xff] %v148_v56  ;;  %v152_v0 = vmax.f32 %v120_v57, 0.0 }
  0x1c   :  { %v153_v3 = vmax.f32 %v121_v58, 0.0  ;;  %v154_v4 = vmax.f32 %v122_v59, 0.0  ;;  %181 = vst [vmem:[%s483_s3 + $0xc8] sm:$0xff] %v149_v60  ;;  %182 = vst [vmem:[%s483_s3 + $0xd0] sm:$0xff] %v150_v61 }
  0x1d   :  { %183 = vst [vmem:[%s483_s3 + $0xd8] sm:$0xff] %v151_v62  ;;  %v155_v1 = vmax.f32 %v123_v63, 0.0  ;;  %184 = vst [vmem:[%s483_s3 + $0xe0] sm:$0xff] %v152_v0 }
  0x1e   :  { %185 = vst [vmem:[%s483_s3 + $0xe8] sm:$0xff] %v153_v3  ;;  %186 = vst [vmem:[%s483_s3 + $0xf0] sm:$0xff] %v154_v4 }
  0x1f   :  { %187 = vst [vmem:[%s483_s3 + $0xf8] sm:$0xff] %v155_v1 }

// kernel: resblock_forward.7
= control target key start
LH: loop header
LB: loop body
LE: loop exit
PB: predicated region body
PF: predicated region fallthrough
CT: control target
= control target key end

     0   :  { %s648_s0 = inlined_call_operand.vmem [shape: f32[256,128], index: 0, kind: input, shape index: {}]   ;;  %s649_s1 = inlined_call_operand.vmem [shape: f32[1,128], index: 1, kind: input, shape index: {}]   ;;  %s650_s2 = inlined_call_operand.vmem [shape: f32[1,128], index: 2, kind: input, shape index: {}]   ;;  %s651_s3 = inlined_call_operand.vmem [shape: f32[256,128], index: 3, kind: input, shape index: {}]   ;;  %s652_s4 = inlined_call_operand.vmem [shape: f32[256,128], index: 4, kind: output, shape index: {}]  }
   0x1   :  { %v17_v0 = vld [vmem:[%s648_s0] sm:$0xff]  ;;  %v18_v4 = vld [vmem:[%s648_s0 + $0x8] sm:$0xff]  ;;  %v19_v6 = vld [vmem:[%s648_s0 + $0x10] sm:$0xff] }
   0x2   :  { %v292_v1 = vld [vmem:[%s649_s1] ss:$0 sm:$0xff]  ;;  %v20_v7 = vld [vmem:[%s648_s0 + $0x18] sm:$0xff]  ;;  %v22_v15 = vld [vmem:[%s648_s0 + $0x28] sm:$0xff] }
   0x3   :  { %v297_v2 = vld [vmem:[%s650_s2] ss:$0 sm:$0xff]  ;;  %v56_v3 = vmul.f32 %v292_v1, %v17_v0  ;;  %v57_v5 = vmul.f32 %v292_v1, %v18_v4  ;;  %v58_v9 = vmul.f32 %v292_v1, %v19_v6  ;;  %v59_v10 = vmul.f32 %v292_v1, %v20_v7  ;;  %v23_v16 = vld [vmem:[%s648_s0 + $0x30] sm:$0xff]  ;;  %v160_v18 = vld [vmem:[%s651_s3 + $0x8] sm:$0xff] }
   0x4   :  { %v21_v11 = vld [vmem:[%s648_s0 + $0x20] sm:$0xff]  ;;  %v61_v21 = vmul.f32 %v292_v1, %v22_v15  ;;  %v24_v22 = vld [vmem:[%s648_s0 + $0x38] sm:$0xff]  ;;  %v161_v24 = vld [vmem:[%s651_s3 + $0x10] sm:$0xff]  ;;  %v62_v27 = vmul.f32 %v292_v1, %v23_v16 }
   0x5   :  { %v95_v8 = vadd.f32 %v297_v2, %v56_v3  ;;  %v159_v12 = vld [vmem:[%s651_s3] sm:$0xff]  ;;  %v96_v13 = vadd.f32 %v297_v2, %v57_v5  ;;  %v60_v14 = vmul.f32 %v292_v1, %v21_v11  ;;  %v97_v19 = vadd.f32 %v297_v2, %v58_v9  ;;  %v162_v25 = vld [vmem:[%s651_s3 + $0x18] sm:$0xff]  ;;  %v26_v35 = vld [vmem:[%s648_s0 + $0x48] sm:$0xff] }
   0x6   :  { %v98_v20 = vadd.f32 %v297_v2, %v59_v10  ;;  %v63_v28 = vmul.f32 %v292_v1, %v24_v22  ;;  %v25_v29 = vld [vmem:[%s648_s0 + $0x40] sm:$0xff]  ;;  %v100_v34 = vadd.f32 %v297_v2, %v61_v21  ;;  %v164_v38 = vld [vmem:[%s651_s3 + $0x28] sm:$0xff]  ;;  %v101_v39 = vadd.f32 %v297_v2, %v62_v27  ;;  %v27_v41 = vld [vmem:[%s648_s0 + $0x50] sm:$0xff] }
   0x7   :  { %v127_v17 = vmax.f32 %v95_v8, 0.0  ;;  %v128_v23 = vmax.f32 %v96_v13, 0.0  ;;  %v99_v26 = vadd.f32 %v297_v2, %v60_v14  ;;  %v129_v31 = vmax.f32 %v97_v19, 0.0  ;;  %v163_v33 = vld [vmem:[%s651_s3 + $0x20] sm:$0xff]  ;;  %v28_v42 = vld [vmem:[%s648_s0 + $0x58] sm:$0xff]  ;;  %v165_v46 = vld [vmem:[%s651_s3 + $0x30] sm:$0xff] }
   0x8   :  { %v130_v32 = vmax.f32 %v98_v20, 0.0  ;;  %v102_v40 = vadd.f32 %v297_v2, %v63_v28  ;;  %v132_v45 = vmax.f32 %v100_v34, 0.0  ;;  %v166_v47 = vld [vmem:[%s651_s3 + $0x38] sm:$0xff]  ;;  %v64_v48 = vmul.f32 %v292_v1, %v25_v29  ;;  %v29_v49 = vld [vmem:[%s648_s0 + $0x60] sm:$0xff]  ;;  %v30_v54 = vld [vmem:[%s648_s0 + $0x68] sm:$0xff] }
   0x9   :  { %v191_v30 = vadd.f32 %v159_v12, %v127_v17  ;;  %v192_v36 = vadd.f32 %v160_v18, %v128_v23  ;;  %v131_v37 = vmax.f32 %v99_v26, 0.0  ;;  %v193_v43 = vadd.f32 %v161_v24, %v129_v31  ;;  %v31_v59 = vld [vmem:[%s648_s0 + $0x70] sm:$0xff]  ;;  %v32_v60 = vld [vmem:[%s648_s0 + $0x78] sm:$0xff]  ;;  %v167_v63 = vld [vmem:[%s651_s3 + $0x40] sm:$0xff] }
   0xa   :  { %v194_v44 = vadd.f32 %v162_v25, %v130_v32  ;;  %v133_v51 = vmax.f32 %v101_v39, 0.0  ;;  %v134_v52 = vmax.f32 %v102_v40, 0.0  ;;  %v65_v53 = vmul.f32 %v292_v1, %v26_v35  ;;  %v168_v5 = vld [vmem:[%s651_s3 + $0x48] sm:$0xff]  ;;  %v169_v10 = vld [vmem:[%s651_s3 + $0x50] sm:$0xff]  ;;  %v170_v11 = vld [vmem:[%s651_s3 + $0x58] sm:$0xff] }
   0xb   :  { %223 = vst [vmem:[%s652_s4] sm:$0xff] %v191_v30  ;;  %224 = vst [vmem:[%s652_s4 + $0x8] sm:$0xff] %v192_v36  ;;  %v195_v50 = vadd.f32 %v163_v33, %v131_v37  ;;  %v196_v55 = vadd.f32 %v164_v38, %v132_v45  ;;  %v103_v56 = vadd.f32 %v297_v2, %v64_v48  ;;  %v33_v15 = vld [vmem:[%s648_s0 + $0x80] sm:$0xff]  ;;  %v34_v21 = vld [vmem:[%s648_s0 + $0x88] sm:$0xff] }
   0xc   :  { %225 = vst [vmem:[%s652_s4 + $0x10] sm:$0xff] %v193_v43  ;;  %226 = vst [vmem:[%s652_s4 + $0x18] sm:$0xff] %v194_v44  ;;  %v66_v57 = vmul.f32 %v292_v1, %v27_v41  ;;  %v67_v58 = vmul.f32 %v292_v1, %v28_v42  ;;  %v197_v61 = vadd.f32 %v165_v46, %v133_v51  ;;  %v171_v19 = vld [vmem:[%s651_s3 + $0x60] sm:$0xff]  ;;  %v172_v24 = vld [vmem:[%s651_s3 + $0x68] sm:$0xff] }
   0xd   :  { %227 = vst [vmem:[%s652_s4 + $0x20] sm:$0xff] %v195_v50  ;;  %v198_v62 = vadd.f32 %v166_v47, %v134_v52  ;;  %v104_v0 = vadd.f32 %v297_v2, %v65_v53  ;;  %v68_v3 = vmul.f32 %v292_v1, %v29_v49  ;;  %228 = vst [vmem:[%s652_s4 + $0x28] sm:$0xff] %v196_v55  ;;  %v135_v4 = vmax.f32 %v103_v56, 0.0  ;;  %v35_v27 = vld [vmem:[%s648_s0 + $0x90] sm:$0xff]  ;;  %v36_v28 = vld [vmem:[%s648_s0 + $0x98] sm:$0xff] }
   0xe   :  { %v105_v6 = vadd.f32 %v297_v2, %v66_v57  ;;  %v106_v7 = vadd.f32 %v297_v2, %v67_v58  ;;  %v69_v8 = vmul.f32 %v292_v1, %v30_v54  ;;  %229 = vst [vmem:[%s652_s4 + $0x30] sm:$0xff] %v197_v61  ;;  %v70_v13 = vmul.f32 %v292_v1, %v31_v59  ;;  %v173_v32 = vld [vmem:[%s651_s3 + $0x70] sm:$0xff]  ;;  %v174_v33 = vld [vmem:[%s651_s3 + $0x78] sm:$0xff]  ;;  %v37_v35 = vld [vmem:[%s648_s0 + $0xa0] sm:$0xff] }
   0xf   :  { %230 = vst [vmem:[%s652_s4 + $0x38] sm:$0xff] %v198_v62  ;;  %v136_v9 = vmax.f32 %v104_v0, 0.0  ;;  %v107_v12 = vadd.f32 %v297_v2, %v68_v3  ;;  %v71_v14 = vmul.f32 %v292_v1, %v32_v60  ;;  %v199_v16 = vadd.f32 %v167_v63, %v135_v4  ;;  %v38_v40 = vld [vmem:[%s648_s0 + $0xa8] sm:$0xff]  ;;  %v39_v45 = vld [vmem:[%s648_s0 + $0xb0] sm:$0xff]  ;;  %v40_v46 = vld [vmem:[%s648_s0 + $0xb8] sm:$0xff] }
  0x10   :  { %v137_v17 = vmax.f32 %v105_v6, 0.0  ;;  %v138_v18 = vmax.f32 %v106_v7, 0.0  ;;  %v108_v20 = vadd.f32 %v297_v2, %v69_v8  ;;  %v109_v25 = vadd.f32 %v297_v2, %v70_v13  ;;  %v175_v49 = vld [vmem:[%s651_s3 + $0x80] sm:$0xff]  ;;  %v176_v53 = vld [vmem:[%s651_s3 + $0x88] sm:$0xff]  ;;  %v177_v58 = vld [vmem:[%s651_s3 + $0x90] sm:$0xff] }
  0x11   :  { %v200_v22 = vadd.f32 %v168_v5, %v136_v9  ;;  %v139_v23 = vmax.f32 %v107_v12, 0.0  ;;  %v110_v26 = vadd.f32 %v297_v2, %v71_v14  ;;  %231 = vst [vmem:[%s652_s4 + $0x40] sm:$0xff] %v199_v16  ;;  %v72_v34 = vmul.f32 %v292_v1, %v33_v15  ;;  %v178_v59 = vld [vmem:[%s651_s3 + $0x98] sm:$0xff]  ;;  %v41_v63 = vld [vmem:[%s648_s0 + $0xc0] sm:$0xff]  ;;  %v42_v7 = vld [vmem:[%s648_s0 + $0xc8] sm:$0xff] }
  0x12   :  { %v201_v29 = vadd.f32 %v169_v10, %v137_v17  ;;  %v202_v30 = vadd.f32 %v170_v11, %v138_v18  ;;  %v140_v31 = vmax.f32 %v108_v20, 0.0  ;;  %v141_v37 = vmax.f32 %v109_v25, 0.0  ;;  %v179_v5 = vld [vmem:[%s651_s3 + $0xa0] sm:$0xff]  ;;  %v180_v10 = vld [vmem:[%s651_s3 + $0xa8] sm:$0xff]  ;;  %v43_v13 = vld [vmem:[%s648_s0 + $0xd0] sm:$0xff] }
  0x13   :  { %232 = vst [vmem:[%s652_s4 + $0x48] sm:$0xff] %v200_v22  ;;  %v203_v36 = vadd.f32 %v171_v19, %v139_v23  ;;  %v142_v38 = vmax.f32 %v110_v26, 0.0  ;;  %v73_v39 = vmul.f32 %v292_v1, %v34_v21  ;;  %v111_v42 = vadd.f32 %v297_v2, %v72_v34  ;;  %v44_v14 = vld [vmem:[%s648_s0 + $0xd8] sm:$0xff]  ;;  %v181_v18 = vld [vmem:[%s651_s3 + $0xb0] sm:$0xff]  ;;  %v45_v21 = vld [vmem:[%s648_s0 + $0xe0] sm:$0xff] }
  0x14   :  { %233 = vst [vmem:[%s652_s4 + $0x50] sm:$0xff] %v201_v29  ;;  %234 = vst [vmem:[%s652_s4 + $0x58] sm:$0xff] %v202_v30  ;;  %v204_v41 = vadd.f32 %v172_v24, %v140_v31  ;;  %v74_v43 = vmul.f32 %v292_v1, %v35_v27  ;;  %v75_v44 = vmul.f32 %v292_v1, %v36_v28  ;;  %v182_v19 = vld [vmem:[%s651_s3 + $0xb8] sm:$0xff]  ;;  %v46_v26 = vld [vmem:[%s648_s0 + $0xe8] sm:$0xff] }
  0x15   :  { %235 = vst [vmem:[%s652_s4 + $0x60] sm:$0xff] %v203_v36  ;;  %v205_v47 = vadd.f32 %v173_v32, %v141_v37  ;;  %v206_v48 = vadd.f32 %v174_v33, %v142_v38  ;;  %v112_v50 = vadd.f32 %v297_v2, %v73_v39  ;;  %v76_v51 = vmul.f32 %v292_v1, %v37_v35  ;;  %v47_v31 = vld [vmem:[%s648_s0 + $0xf0] sm:$0xff]  ;;  %v48_v32 = vld [vmem:[%s648_s0 + $0xf8] sm:$0xff]  ;;  %v183_v35 = vld [vmem:[%s651_s3 + $0xc0] sm:$0xff] }
  0x16   :  { %236 = vst [vmem:[%s652_s4 + $0x68] sm:$0xff] %v204_v41  ;;  %v143_v52 = vmax.f32 %v111_v42, 0.0  ;;  %v113_v54 = vadd.f32 %v297_v2, %v74_v43  ;;  %v114_v55 = vadd.f32 %v297_v2, %v75_v44  ;;  %v77_v56 = vmul.f32 %v292_v1, %v38_v40  ;;  %v184_v39 = vld [vmem:[%s651_s3 + $0xc8] sm:$0xff]  ;;  %v185_v44 = vld [vmem:[%s651_s3 + $0xd0] sm:$0xff] }
  0x17   :  { %237 = vst [vmem:[%s652_s4 + $0x70] sm:$0xff] %v205_v47  ;;  %238 = vst [vmem:[%s652_s4 + $0x78] sm:$0xff] %v206_v48  ;;  %v144_v57 = vmax.f32 %v112_v50, 0.0  ;;  %v115_v60 = vadd.f32 %v297_v2, %v76_v51  ;;  %v78_v61 = vmul.f32 %v292_v1, %v39_v45  ;;  %v79_v62 = vmul.f32 %v292_v1, %v40_v46  ;;  %v186_v45 = vld [vmem:[%s651_s3 + $0xd8] sm:$0xff] }
  0x18   :  { %v207_v0 = vadd.f32 %v175_v49, %v143_v52  ;;  %v145_v3 = vmax.f32 %v113_v54, 0.0  ;;  %v146_v4 = vmax.f32 %v114_v55, 0.0  ;;  %v116_v6 = vadd.f32 %v297_v2, %v77_v56  ;;  %v187_v52 = vld [vmem:[%s651_s3 + $0xe0] sm:$0xff]  ;;  %v188_v56 = vld [vmem:[%s651_s3 + $0xe8] sm:$0xff] }
  0x19   :  { %v208_v8 = vadd.f32 %v176_v53, %v144_v57  ;;  %v147_v9 = vmax.f32 %v115_v60, 0.0  ;;  %v117_v11 = vadd.f32 %v297_v2, %v78_v61  ;;  %v118_v12 = vadd.f32 %v297_v2, %v79_v62  ;;  %v189_v61 = vld [vmem:[%s651_s3 + $0xf0] sm:$0xff]  ;;  %v190_v62 = vld [vmem:[%s651_s3 + $0xf8] sm:$0xff] }
  0x1a   :  { %239 = vst [vmem:[%s652_s4 + $0x80] sm:$0xff] %v207_v0  ;;  %v209_v15 = vadd.f32 %v177_v58, %v145_v3  ;;  %v210_v16 = vadd.f32 %v178_v59, %v146_v4  ;;  %v148_v17 = vmax.f32 %v116_v6, 0.0  ;;  %v80_v20 = vmul.f32 %v292_v1, %v41_v63 }
  0x1b   :  { %240 = vst [vmem:[%s652_s4 + $0x88] sm:$0xff] %v208_v8  ;;  %v211_v22 = vadd.f32 %v179_v5, %v147_v9  ;;  %v149_v23 = vmax.f32 %v117_v11, 0.0  ;;  %v150_v24 = vmax.f32 %v118_v12, 0.0  ;;  %v81_v25 = vmul.f32 %v292_v1, %v42_v7 }
  0x1c   :  { %241 = vst [vmem:[%s652_s4 + $0x90] sm:$0xff] %v209_v15  ;;  %242 = vst [vmem:[%s652_s4 + $0x98] sm:$0xff] %v210_v16  ;;  %v212_v27 = vadd.f32 %v180_v10, %v148_v17  ;;  %v119_v28 = vadd.f32 %v297_v2, %v80_v20  ;;  %v82_v29 = vmul.f32 %v292_v1, %v43_v13 }
  0x1d   :  { %v83_v30 = vmul.f32 %v292_v1, %v44_v14  ;;  %243 = vst [vmem:[%s652_s4 + $0xa0] sm:$0xff] %v211_v22  ;;  %v213_v33 = vadd.f32 %v181_v18, %v149_v23  ;;  %v214_v34 = vadd.f32 %v182_v19, %v150_v24  ;;  %v120_v36 = vadd.f32 %v297_v2, %v81_v25 }
  0x1e   :  { %v84_v37 = vmul.f32 %v292_v1, %v45_v21  ;;  %244 = vst [vmem:[%s652_s4 + $0xa8] sm:$0xff] %v212_v27  ;;  %v151_v38 = vmax.f32 %v119_v28, 0.0  ;;  %v121_v40 = vadd.f32 %v297_v2, %v82_v29  ;;  %v85_v42 = vmul.f32 %v292_v1, %v46_v26 }
  0x1f   :  { %v122_v41 = vadd.f32 %v297_v2, %v83_v30  ;;  %245 = vst [vmem:[%s652_s4 + $0xb0] sm:$0xff] %v213_v33  ;;  %246 = vst [vmem:[%s652_s4 + $0xb8] sm:$0xff] %v214_v34  ;;  %v152_v43 = vmax.f32 %v120_v36, 0.0  ;;  %v86_v47 = vmul.f32 %v292_v1, %v47_v31  ;;  %v87_v48 = vmul.f32 %v292_v1, %v48_v32 }
  0x20   :  { %v123_v46 = vadd.f32 %v297_v2, %v84_v37  ;;  %v215_v49 = vadd.f32 %v183_v35, %v151_v38  ;;  %v153_v50 = vmax.f32 %v121_v40, 0.0  ;;  %v124_v53 = vadd.f32 %v297_v2, %v85_v42 }
  0x21   :  { %v154_v51 = vmax.f32 %v122_v41, 0.0  ;;  %v216_v54 = vadd.f32 %v184_v39, %v152_v43  ;;  %v125_v57 = vadd.f32 %v297_v2, %v86_v47  ;;  %v126_v58 = vadd.f32 %v297_v2, %v87_v48 }
  0x22   :  { %v155_v55 = vmax.f32 %v123_v46, 0.0  ;;  %247 = vst [vmem:[%s652_s4 + $0xc0] sm:$0xff] %v215_v49  ;;  %v217_v1 = vadd.f32 %v185_v44, %v153_v50  ;;  %v156_v60 = vmax.f32 %v124_v53, 0.0 }
  0x23   :  { %v218_v59 = vadd.f32 %v186_v45, %v154_v51  ;;  %248 = vst [vmem:[%s652_s4 + $0xc8] sm:$0xff] %v216_v54  ;;  %v157_v63 = vmax.f32 %v125_v57, 0.0  ;;  %v158_v0 = vmax.f32 %v126_v58, 0.0 }
  0x24   :  { %v219_v2 = vadd.f32 %v187_v52, %v155_v55  ;;  %249 = vst [vmem:[%s652_s4 + $0xd0] sm:$0xff] %v217_v1  ;;  %v220_v3 = vadd.f32 %v188_v56, %v156_v60 }
  0x25   :  { %250 = vst [vmem:[%s652_s4 + $0xd8] sm:$0xff] %v218_v59  ;;  %v221_v4 = vadd.f32 %v189_v61, %v157_v63  ;;  %v222_v5 = vadd.f32 %v190_v62, %v158_v0 }
  0x26   :  { %251 = vst [vmem:[%s652_s4 + $0xe0] sm:$0xff] %v219_v2  ;;  %252 = vst [vmem:[%s652_s4 + $0xe8] sm:$0xff] %v220_v3 }
  0x27   :  { %253 = vst [vmem:[%s652_s4 + $0xf0] sm:$0xff] %v221_v4  ;;  %254 = vst [vmem:[%s652_s4 + $0xf8] sm:$0xff] %v222_v5 }

// kernel: resblock_forward.4
= control target key start
LH: loop header
LB: loop body
LE: loop exit
PB: predicated region body
PF: predicated region fallthrough
CT: control target
= control target key end

     0   :  { %s5402_s18 = smov 0   ;;  %s5404_s19 = smov 0   ;;  %s6698_s0 = inlined_call_operand.vmem [shape: bf16[2,10,10,10,32], index: 0, kind: input, shape index: {}, may-alias: {0,1,2}]   ;;  %s6699_s1 = inlined_call_operand.vmem [shape: bf16[2,10,10,10,32], index: 1, kind: input, shape index: {}, may-alias: {0,1,2}]   ;;  %s6700_s2 = inlined_call_operand.vmem [shape: bf16[2,10,10,10,32], index: 2, kind: input, shape index: {}, may-alias: {0,1,2}]   ;;  %s6701_s3 = inlined_call_operand.vmem [shape: bf16[27,32,32], index: 3, kind: input, shape index: {}]   ;;  %s6702_s4 = inlined_call_operand.vmem [shape: f32[2,8,64,32], index: 4, kind: output, shape index: {0}]   ;;  %s6703_s5 = inlined_call_operand.vmem [shape: f32[2,8,2,32], index: 5, kind: output, shape index: {1}]  }
   0x1   :  { %s5406_s20 = smov 0   ;;  %s5408_s21 = smov 0  }
   0x2   :  { %s5410_s22 = smov 0  }
   0x3 LB: > { %s25_s23 = sadd.s32 1, %s5362_s20  ;;  %s28_s24 = sadd.s32 1, %s5366_s21  ;;  %s5370_s22 = sphi %s5410_s22, %s16_s22   ;;  %s5366_s21 = sphi %s5408_s21, %s6796_s21   ;;  %s5362_s20 = sphi %s5406_s20, %s6795_s20   ;;  %s5358_s19 = sphi %s5404_s19, %s6794_s19   ;;  %s5354_s18 = sphi %s5402_s18, %s6793_s18  }
   0x4   : > { %p26_p0 = scmp.ge.s32.totalorder %s25_s23, 8  ;;  %p4109_p1 = scmp.ge.s32.totalorder %s5370_s22, 1 }
   0x5   : > { %p252_p2 = scmp.lt.s32.totalorder %s5370_s22, 17 }
   0x6   : > { %s6798_s23 = smov (%p26_p0, %s25_s23), 0  ;;  %s6800_s24 = smov (!%p26_p0, %s28_s24), %s5366_s21 }
   0x7   : > { %p253_p3 = pnand %p4109_p1, %p252_p2  ;;  %p30_p4 = scmp.ge.s32.totalorder %s6800_s24, 2 }
   0x9   : > { %s6802_s24 = smov (%p30_p4, %s6800_s24), 0  ;;  %256 = sbr.rel (%p253_p3) target bundleno = 511 (0x1ff), region = 36 }
  0x10   : > { %v5239_v0 = vld [vmem:[%s6701_s3 + $0x10] sm:$0xff]   ;;  %p316_p5 = scmp.lt.s32.totalorder %s5358_s19, 1  ;;  %p318_p6 = scmp.lt.s32.totalorder %s5354_s18, 9  ;;  %v5241_v2 = vld [vmem:[%s6701_s3 + $0x18] sm:$0xff]   ;;  %v5456_v4 = vld [vmem:[%s6701_s3] sm:$0xff]   ;;  %vm573_vm3 = vcmask 261120  }
  0x11   : > { %v5240_v1 = vld [vmem:[%s6701_s3 + $0xd0] sm:$0xff]   ;;  %4659 = vmatprep.subr.bf16.mxu1 %v5239_v0  ;;  %v5242_v3 = vld [vmem:[%s6701_s3 + $0xd8] sm:$0xff]   ;;  %s325_s13 = sadd.s32 1, %s5354_s18  ;;  %v5463_v5 = vld [vmem:[%s6701_s3 + $0xe0] sm:$0xff]   ;;  %vm429_vm0 = vsmask.f32 3328 }
  0x12   : > { %s6804_s19 = smov (!%p316_p5, %s5358_s19), 1  ;;  %4815 = vmatprep.subr.bf16.mxu0 %v5240_v1  ;;  %4660 = vmatpush3.bf16.msra.mxu1 %v5239_v0  ;;  %p5471_p7 = scmp.lt.s32.totalorder %s325_s13, 9  ;;  %vm430_vm1 = vsmask.f32 7440  ;;  %v5246_v63 = vld [vmem:[%s6701_s3 + $0x8] sm:$0xff]   ;;  %vm768_vm4 = vcmask 1042432  }
  0x13   : > { %s319_s8 = scalar_select %p318_p6, %s5354_s18, 9  ;;  %4816 = vmatpush3.bf16.msra.mxu0 %v5240_v1  ;;  %4661 = vmatprep.subr.bf16.mxu1 %v5241_v2  ;;  %vm5517_vm2 = vmor %vm429_vm0, %vm430_vm1  ;;  %vm769_vm5 = vcmask 1046532   ;;  %vm3917_vm7 = vcmask 1040384   ;;  %vm3919_vm8 = vcmask 254976  }
  0x14   : > { %s5451_s9 = smul.u32 200, %s6804_s19  ;;  %4817 = vmatprep.subr.bf16.mxu0 %v5242_v3  ;;  %s6806_s13 = smov (!%p5471_p7, %s325_s13), 9  ;;  %vm5668_vm6 = vmor %vm768_vm4, %vm769_vm5 }
  0x15   : > { %s5195_s10 = smul.u32 20, %s319_s8  ;;  %s336_s12 = sadd.s32 2, %s5354_s18 }
  0x16   : > { %4662 = vmatpush3.bf16.msra.mxu1 %v5241_v2  ;;  %s5197_s29 = smul.u32 20, %s6806_s13  ;;  %p5872_p8 = scmp.lt.s32.totalorder %s336_s12, 9 }
  0x17   : > { %s322_s14 = sadd.s32 %s5451_s9, %s5195_s10  ;;  %4818 = vmatpush3.bf16.msra.mxu0 %v5242_v3  ;;  %4671 = vmatprep.subr.bf16.mxu1 %v5456_v4  ;;  %p349_p9 = scmp.lt.s32.totalorder %s5354_s18, 7 }
  0x18   : > { %s4110_s17 = sshll.u32 %s322_s14, 2  ;;  %4827 = vmatprep.subr.bf16.mxu0 %v5463_v5  ;;  %s332_s30 = sadd.s32 %s5197_s29, %s5451_s9 }
  0x19   : > { %s5469_s27 = scalar_lea.vmem %s6698_s0, %s4110_s17  ;;  %s4111_s6 = sshll.u32 %s332_s30, 2 }
  0x1a   : > { %v5477_v6 = vld [vmem:[%s5469_s27] sm:$0xf]  ;;  %v5480_v7 = vld [vmem:[%s5469_s27 + $0x4] sm:$0x1]  ;;  %v5483_v8 = vld [vmem:[%s5469_s27 + $0x8] sm:$0xf]  ;;  %s5535_s10 = scalar_lea.vmem %s6699_s1, %s4111_s6 }
  0x1b   : > { %v5486_v9 = vld [vmem:[%s5469_s27 + $0xc] sm:$0x1]  ;;  %v5489_v10 = vld [vmem:[%s5469_s27 + $0x10] sm:$0xf]  ;;  %v5492_v11 = vld [vmem:[%s5469_s27 + $0x14] sm:$0x1] }
  0x1c   : > { %v5497_v13 = vld [vmem:[%s5469_s27 + $0x18] sm:$0xf]  ;;  %v433_v14 = vshrl.u32 %v5477_v6, 16  ;;  %v436_v15 = vshll.u32 %v5477_v6, 16  ;;  %v442_v16 = vshll.u32 %v5480_v7, 16  ;;  %v447_v17 = vshrl.u32 %v5483_v8, 16 }
  0x1d   : > { %v450_v18 = vshll.u32 %v5483_v8, 16  ;;  %v456_v19 = vshll.u32 %v5486_v9, 16  ;;  %v461_v20 = vshrl.u32 %v5489_v10, 16  ;;  %v464_v21 = vshll.u32 %v5489_v10, 16  ;;  %v5510_v22 = vld [vmem:[%s5469_s27 + $0x1c] sm:$0x1] }
  0x1e   : > { %v435_v23 = vrot.slane %v433_v14, 4  ;;  %v438_v24 = vrot.slane %v436_v15, 5  ;;  %v449_v25 = vrot.slane %v447_v17, 4  ;;  %v444_v26 = vrot.slane %v442_v16, 5  ;;  %v5524_v45 = vld [vmem:[%s5469_s27 + $0x20] sm:$0xf] }
  0x1f   : > { %v452_v27 = vrot.slane %v450_v18, 5  ;;  %v463_v28 = vrot.slane %v461_v20, 4  ;;  %v466_v29 = vrot.slane %v464_v21, 5  ;;  %v470_v31 = vshll.u32 %v5492_v11, 16  ;;  %v386_v56 = vld [vmem:[%s5535_s10 + $0x4] sm:$0x1] }
  0x20   : > { %v439_v30 = vor.u32 %v438_v24, %v435_v23  ;;  %v475_v32 = vshrl.u32 %v5497_v13, 16  ;;  %v478_v33 = vshll.u32 %v5497_v13, 16  ;;  %v458_v36 = vrot.slane %v456_v19, 5  ;;  %v5552_v57 = vld [vmem:[%s5535_s10 + $0x8] sm:$0xf]  ;;  %v5589_v20 = vld [vmem:[%s6701_s3 + $0x20] sm:$0xff]  }
  0x21   : > { %v453_v35 = vor.u32 %v452_v27, %v449_v25  ;;  %v467_v37 = vor.u32 %v466_v29, %v463_v28  ;;  %v484_v38 = vshll.u32 %v5510_v22, 16  ;;  %v472_v40 = vrot.slane %v470_v31, 5  ;;  %v5555_v58 = vld [vmem:[%s5535_s10 + $0xc] sm:$0x1]  ;;  %v385_v61 = vld [vmem:[%s5535_s10] sm:$0xf] }
  0x22   : > { %v440_v39 = vrot.slane %v439_v30, 4  ;;  %v477_v41 = vrot.slane %v475_v32, 4  ;;  %v480_v42 = vrot.slane %v478_v33, 5  ;;  %v489_v53 = vshrl.u32 %v5524_v45, 16  ;;  %v5564_v62 = vld [vmem:[%s5535_s10 + $0x10] sm:$0xf] }
  0x23   : > { %v454_v43 = vrot.slane %v453_v35, 4  ;;  %v468_v44 = vrot.slane %v467_v37, 4  ;;  %v486_v48 = vrot.slane %v484_v38, 5  ;;  %v492_v59 = vshll.u32 %v5524_v45, 16  ;;  %v5570_v0 = vld [vmem:[%s5535_s10 + $0x14] sm:$0x1] }
  0x24   : > { %v445_v46 = vsel %vm5517_vm2, %v440_v39, %v444_v26  ;;  %v481_v47 = vor.u32 %v480_v42, %v477_v41  ;;  %v5573_v1 = vld [vmem:[%s5535_s10 + $0x18] sm:$0xf]  ;;  %v1686_v2 = vshrl.u32 %v385_v61, 16  ;;  %v1689_v3 = vshll.u32 %v385_v61, 16  ;;  %v5578_v14 = vld [vmem:[%s5535_s10 + $0x1c] sm:$0x1] }
  0x25   : > { %v5530_v49 = vsel %vm5517_vm2, %v454_v43, %v458_v36  ;;  %v5539_v50 = vsel %vm5517_vm2, %v468_v44, %v472_v40  ;;  %v5581_v15 = vld [vmem:[%s5535_s10 + $0x20] sm:$0xf]  ;;  %v1695_v16 = vshll.u32 %v386_v56, 16  ;;  %v1700_v17 = vshrl.u32 %v5552_v57, 16  ;;  %v5594_v30 = vld [vmem:[%s5469_s27 + $0x24] sm:$0x1] }
  0x26   : > { %v482_v51 = vrot.slane %v481_v47, 4  ;;  %v4122_v52 = vcombine.low %v445_v46, %v5530_v49  ;;  %v1703_v18 = vshll.u32 %v5552_v57, 16  ;;  %v1709_v19 = vshll.u32 %v5555_v58, 16  ;;  %v5598_v36 = vld [vmem:[%s5535_s10 + $0x24] sm:$0x1]  ;;  %s6808_s12 = smov (!%p5872_p8, %s336_s12), 9 }
  0x27   : > { %v491_v21 = vrot.slane %v489_v53, 4  ;;  %v1688_v23 = vrot.slane %v1686_v2, 4  ;;  %v1691_v24 = vrot.slane %v1689_v3, 5  ;;  %v1714_v25 = vshrl.u32 %v5564_v62, 16  ;;  %s5198_s28 = smul.u32 20, %s6808_s12  ;;  %s6810_s18 = smov (!%p349_p9, %s5354_s18), 7 }
  0x28   : > { %v5545_v54 = vsel %vm5517_vm2, %v482_v51, %v486_v48  ;;  %4663 = vmatprep.mubr.msk.bf16.mxu1 %vm573_vm3, %v4122_v52  ;;  %v494_v26 = vrot.slane %v492_v59, 5  ;;  %v1697_v27 = vrot.slane %v1695_v16, 5  ;;  %v1702_v28 = vrot.slane %v1700_v17, 4  ;;  %s4114_s29 = sshll.u32 %s6804_s19, 6  ;;  %s4116_s11 = sshll.u32 %s6804_s19, 3 }
  0x29   : > { %v5560_v60 = vcombine.low %v5539_v50, %v5545_v54  ;;  %v1705_v29 = vrot.slane %v1703_v18, 5  ;;  %v1692_v31 = vor.u32 %v1691_v24, %v1688_v23  ;;  %v1711_v32 = vrot.slane %v1709_v19, 5  ;;  %v5614_v18 = vld [vmem:[%s5469_s27 + $0x28] sm:$0xf]  ;;  %s343_s6 = sadd.s32 %s5198_s28, %s5451_s9  ;;  %s361_s12 = sadd.s32 %s4116_s11, %s6810_s18 }
  0x2a   : > { %v1716_v33 = vrot.slane %v1714_v25, 4  ;;  %v1717_v35 = vshll.u32 %v5564_v62, 16  ;;  %v1723_v38 = vshll.u32 %v5570_v0, 16  ;;  %v1728_v39 = vshrl.u32 %v5573_v1, 16  ;;  %v5619_v25 = vld [vmem:[%s5469_s27 + $0x2c] sm:$0x1] }
  0x2b   : > { %6732 = vst [vmem:[#allocation2_spill] sm:$0xff] %v5560_v60  ;;  %4664 = vmatmul.mubr.msk.bf16.vlgmr.msra.gmra.mrb[0].mxu1 %vm573_vm3, %v5560_v60  ;;  %v1706_v37 = vor.u32 %v1705_v29, %v1702_v28  ;;  %v1693_v40 = vrot.slane %v1692_v31, 4  ;;  %v1737_v42 = vshll.u32 %v5578_v14, 16  ;;  %v1742_v43 = vshrl.u32 %v5581_v15, 16  ;;  %v5626_v28 = vld [vmem:[%s5469_s27 + $0x30] sm:$0xf] }
  0x2c   : > { %4672 = vmatpush3.bf16.msra.mxu1 %v5456_v4  ;;  %v1731_v4 = vshll.u32 %v5573_v1, 16  ;;  %v1719_v41 = vrot.slane %v1717_v35, 5  ;;  %v1730_v46 = vrot.slane %v1728_v39, 4  ;;  %v498_v48 = vshll.u32 %v5594_v30, 16  ;;  %s4112_s9 = sshll.u32 %s343_s6, 2  ;;  %s4117_s13 = sshll.u32 %s361_s12, 1 }
  0x2d   : > { %4673 = vmatprep.subr.bf16.mxu1 %v5246_v63  ;;  %v1707_v44 = vrot.slane %v1706_v37, 4  ;;  %v1698_v51 = vsel %vm5517_vm2, %v1693_v40, %v1697_v27  ;;  %v1725_v53 = vrot.slane %v1723_v38, 5  ;;  %v1744_v59 = vrot.slane %v1742_v43, 4  ;;  %v5640_v40 = vld [vmem:[%s5469_s27 + $0x38] sm:$0xf]  ;;  %s6022_s15 = scalar_lea.vmem %s6700_s2, %s4112_s9  ;;  %s363_s16 = scalar_lea.vmem %s6703_s5, %s4117_s13 }
  0x2e   : > { %v1733_v47 = vrot.slane %v1731_v4, 5  ;;  %v1720_v52 = vor.u32 %v1719_v41, %v1716_v33  ;;  %v1745_v61 = vshll.u32 %v5581_v15, 16  ;;  %v495_v2 = vor.u32 %v494_v26, %v491_v21  ;;  %v5629_v21 = vld [vmem:[%s5469_s27 + $0x34] sm:$0x1] }
  0x2f   : > { %v1712_v3 = vsel %vm5517_vm2, %v1707_v44, %v1711_v32  ;;  %v1739_v17 = vrot.slane %v1737_v42, 5  ;;  %v500_v26 = vrot.slane %v498_v48, 5  ;;  %v1925_v35 = vrot.slane %v5555_v58, 5  ;;  %v5646_v44 = vld [vmem:[%s5469_s27 + $0x3c] sm:$0x1] }
  0x30   : > { %4674 = vmatpush3.bf16.msra.mxu1 %v5246_v63  ;;  %v1734_v56 = vor.u32 %v1733_v47, %v1730_v46  ;;  %v1751_v63 = vshll.u32 %v5598_v36, 16  ;;  %v1721_v16 = vrot.slane %v1720_v52, 4  ;;  %v1747_v23 = vrot.slane %v1745_v61, 5 }
  0x31   : > { %4683 = vmatprep.subr.bf16.mxu1 %v5589_v20  ;;  %v5616_v24 = vcombine.low %v1698_v51, %v1712_v3  ;;  %v496_v32 = vrot.slane %v495_v2, 4  ;;  %v1929_v38 = vrot.slane %v5570_v0, 5  ;;  %v503_v4 = vshrl.u32 %v5614_v18, 16  ;;  %v5245_v0 = vld [vmem:[%s6701_s3 + $0xe8] sm:$0xff]  }
  0x32   : > { %v1735_v19 = vrot.slane %v1734_v56, 4  ;;  %v5623_v27 = vsel %vm5517_vm2, %v1721_v16, %v1725_v53  ;;  %v1748_v29 = vor.u32 %v1747_v23, %v1744_v59  ;;  %v1753_v31 = vrot.slane %v1751_v63, 5  ;;  %v5673_v16 = vld [vmem:[%s5535_s10 + $0x28] sm:$0xf] }
  0x33   : > { %6733 = vst [vmem:[#allocation3_spill] sm:$0xff] %v5616_v24  ;;  %v4309_v39 = vcombine.low %v1712_v3, %v5623_v27  ;;  %v1933_v41 = vrot.slane %v5578_v14, 5  ;;  %v506_v42 = vshll.u32 %v5614_v18, 16  ;;  %v512_v43 = vshll.u32 %v5619_v25, 16  ;;  %v5314_v3 = vld [vmem:[%s6701_s3 + $0x1a0] sm:$0xff]  }
  0x34   : > { %v5633_v33 = vsel %vm5517_vm2, %v1735_v19, %v1739_v17  ;;  %v1749_v37 = vrot.slane %v1748_v29, 4  ;;  %v517_v46 = vshrl.u32 %v5626_v28, 16  ;;  %v505_v14 = vrot.slane %v503_v4, 4  ;;  %v5676_v17 = vld [vmem:[%s5535_s10 + $0x2c] sm:$0x1] }
  0x35   : > { %4819 = vmatprep.mubr.msk.bf16.mxu0 %vm573_vm3, %v4309_v39  ;;  %v520_v47 = vshll.u32 %v5626_v28, 16  ;;  %v526_v48 = vshll.u32 %v5629_v21, 16  ;;  %v5661_v51 = vsel %vm5517_vm2, %v496_v32, %v500_v26  ;;  %v1937_v52 = vrot.slane %v5598_v36, 5  ;;  %v5690_v4 = vld [vmem:[%s5535_s10 + $0x30] sm:$0xf] }
  0x36   : > { %v5651_v58 = vsel %vm5517_vm2, %v1749_v37, %v1753_v31  ;;  %v508_v56 = vrot.slane %v506_v42, 5  ;;  %v514_v59 = vrot.slane %v512_v43, 5  ;;  %v519_v61 = vrot.slane %v517_v46, 4  ;;  %v5247_v37 = vld [vmem:[%s6701_s3 + $0xf0] sm:$0xff]  }
  0x37   : > { %v4310_v53 = vcombine.low %v5633_v33, %v5651_v58  ;;  %v522_v63 = vrot.slane %v520_v47, 5  ;;  %v528_v2 = vrot.slane %v526_v48, 5  ;;  %v531_v19 = vshrl.u32 %v5640_v40, 16  ;;  %v5693_v42 = vld [vmem:[%s5535_s10 + $0x34] sm:$0x1] }
  0x38   : > { %v509_v36 = vor.u32 %v508_v56, %v505_v14  ;;  %v534_v23 = vshll.u32 %v5640_v40, 16  ;;  %v540_v26 = vshll.u32 %v5646_v44, 16  ;;  %v4270_v31 = vrot.slane %v5552_v57, 9  ;;  %v5708_v56 = vld [vmem:[%s5535_s10 + $0x38] sm:$0xf] }
  0x39   : > { %4820 = vmatmul.mubr.msk.bf16.vlgmr.msra.gmra.mrb[0].mxu0 %vm573_vm3, %v4310_v53  ;;  %v523_v29 = vor.u32 %v522_v63, %v519_v61  ;;  %v4271_v32 = vrot.slane %v5564_v62, 9  ;;  %v4272_v39 = vrot.slane %v5573_v1, 9  ;;  %v533_v43 = vrot.slane %v531_v19, 4  ;;  %v5711_v61 = vld [vmem:[%s5535_s10 + $0x3c] sm:$0x1] }
  0x3a   : > { %4828 = vmatpush3.bf16.msra.mxu0 %v5463_v5  ;;  %v510_v5 = vrot.slane %v509_v36, 4  ;;  %v536_v46 = vrot.slane %v534_v23, 5  ;;  %v542_v57 = vrot.slane %v540_v26, 5  ;;  %v5697_v47 = vsel %vm5668_vm6, %v4270_v31, %v1925_v35  ;;  %v5724_v23 = vld [vmem:[%s5535_s10 + $0x44] sm:$0x1] }
  0x3b   : > { %4829 = vmatprep.subr.bf16.mxu0 %v5245_v0  ;;  %v524_v14 = vrot.slane %v523_v29, 4  ;;  %6736 = vst [vmem:[#allocation4_spill] sm:$0xff] %v5697_v47  ;;  %v5701_v48 = vsel %vm5668_vm6, %v4271_v32, %v1929_v38  ;;  %v5705_v53 = vsel %vm5668_vm6, %v4272_v39, %v1933_v41  ;;  %v4273_v19 = vrot.slane %v5581_v15, 9  ;;  %v5721_v38 = vld [vmem:[%s5535_s10 + $0x40] sm:$0xf] }
  0x3c   : > { %v5715_v63 = vsel %vm5517_vm2, %v510_v5, %v514_v59  ;;  %v537_v36 = vor.u32 %v536_v46, %v533_v43  ;;  %v4324_v35 = vcombine.low %v5697_v47, %v5701_v48  ;;  %v4274_v59 = vrot.slane %v5673_v16, 9 }
  0x3d   : > { %v5728_v41 = vcombine.low %v5661_v51, %v5715_v63  ;;  %v5732_v26 = vsel %vm5517_vm2, %v524_v14, %v528_v2  ;;  %v1941_v29 = vrot.slane %v5676_v17, 5  ;;  %v5739_v32 = vsel %vm5668_vm6, %v4273_v19, %v1937_v52 }
  0x3e   : > { %4830 = vmatpush3.bf16.msra.mxu0 %v5245_v0  ;;  %v538_v31 = vrot.slane %v537_v36, 4  ;;  %4831 = vmatprep.mubr.msk.bf16.mxu0 %vm573_vm3, %v4324_v35  ;;  %v4275_v39 = vrot.slane %v5690_v4, 9  ;;  %v1945_v0 = vrot.slane %v5693_v42, 5  ;;  %v4325_v2 = vcombine.low %v5705_v53, %v5739_v32 }
  0x3f   : > { %6737 = vst [vmem:[#allocation5_spill] sm:$0xff] %v5728_v41  ;;  %4839 = vmatprep.subr.bf16.mxu0 %v5247_v37  ;;  %4667 = vmatprep.mubr.msk.bf16.mxu1 %vm573_vm3, %v5728_v41  ;;  %v4132_v5 = vcombine.low %v5477_v6, %v5483_v8  ;;  %v5751_v43 = vsel %vm5668_vm6, %v4274_v59, %v1941_v29  ;;  %v4276_v14 = vrot.slane %v5708_v56, 9  ;;  %v1949_v36 = vrot.slane %v5711_v61, 5  ;;  %v5251_v29 = vld [vmem:[%s6701_s3 + $0xf8] sm:$0xff]  }
  0x40   : > { %v5755_v52 = vsel %vm5517_vm2, %v538_v31, %v542_v57  ;;  %v5759_v46 = vsel %vm5668_vm6, %v4275_v39, %v1945_v0  ;;  %v4319_v59 = vrot.slane %v5721_v38, 9  ;;  %v2297_v57 = vrot.slane %v5724_v23, 5 }
  0x41   : > { %6738 = vst [vmem:[#allocation6_spill] sm:$0xff] %v5755_v52  ;;  %v5765_v35 = vcombine.low %v5732_v26, %v5755_v52  ;;  %v4326_v19 = vcombine.low %v5751_v43, %v5759_v46  ;;  %v5781_v31 = vsel %vm5668_vm6, %v4276_v14, %v1949_v36  ;;  %v773_v0 = vrot.slane %v5480_v7, 5 }
  0x42   : > { %v5785_v39 = vsel %vm5668_vm6, %v4319_v59, %v2297_v57  ;;  %v4142_v14 = vrot.slane %v5477_v6, 9  ;;  %v4143_v36 = vrot.slane %v5483_v8, 9  ;;  %v781_v7 = vrot.slane %v5492_v11, 5  ;;  %v5254_v6 = vld [vmem:[%s6701_s3 + $0x28] sm:$0xff]  }
  0x43   : > { %6739 = vst [vmem:[#allocation7_spill] sm:$0xff] %v5765_v35  ;;  %4668 = vmatmul.mubr.msk.bf16.gmra.mrb[4].mxu1 %vm573_vm3, %v5765_v35  ;;  %6740 = vst [vmem:[#allocation8_spill] sm:$0xff] %v5785_v39  ;;  %v4327_v59 = vcombine.low %v5781_v31, %v5785_v39  ;;  %v4145_v57 = vrot.slane %v5497_v13, 9  ;;  %v1756_v55 = vshrl.u32 %v5673_v16, 16  ;;  %v5809_v12 = vcombine.low %v5524_v45, %v5614_v18 }
  0x44   : > { %4675 = vmatprep.mubr.msk.bf16.mxu1 %vm573_vm3, %v4132_v5  ;;  %v5796_v5 = vcombine.low %v5489_v10, %v5497_v13  ;;  %v785_v11 = vrot.slane %v5510_v22, 5  ;;  %v5817_v47 = vcombine.low %v5564_v62, %v5573_v1  ;;  %v1784_v24 = vshrl.u32 %v5708_v56, 16 }
  0x45   : > { %4832 = vmatmul.mubr.msk.bf16.vlgmr.msra.gmra.mrb[0].mxu0 %vm573_vm3, %v4325_v2  ;;  %v5791_v2 = vld [vmem:[%s6701_s3 + $0x100] sm:$0xff]   ;;  %v774_v35 = vsel %vm5668_vm6, %v4142_v14, %v773_v0  ;;  %v1793_v22 = vshll.u32 %v5711_v61, 16  ;;  %v2174_v62 = vshrl.u32 %v5721_v38, 16  ;;  %v2177_v52 = vshll.u32 %v5721_v38, 16 }
  0x46   : > { %4840 = vmatpush3.bf16.msra.mxu0 %v5247_v37  ;;  %4835 = vmatprep.mubr.msk.bf16.mxu0 %vm573_vm3, %v4326_v19  ;;  %v777_v37 = vrot.slane %v5486_v9, 5  ;;  %6741 = vst [vmem:[#allocation9_spill] sm:$0xff] %v5796_v5  ;;  %v4144_v19 = vrot.slane %v5489_v10, 9  ;;  %v1759_v9 = vshll.u32 %v5673_v16, 16  ;;  %6742 = vst [vmem:[#allocation10_spill] sm:$0xff] %v5817_v47  ;;  %v1786_v1 = vrot.slane %v1784_v24, 4 }
  0x47   : > { %4841 = vmatprep.subr.bf16.mxu0 %v5251_v29  ;;  %v1758_v39 = vrot.slane %v1756_v55, 4  ;;  %v2176_v24 = vrot.slane %v2174_v62, 4  ;;  %v1770_v61 = vshrl.u32 %v5690_v4, 16  ;;  %v1773_v55 = vshll.u32 %v5690_v4, 16 }
  0x48   : > { %v5828_v41 = vsel %vm5668_vm6, %v4143_v36, %v777_v37  ;;  %v1761_v0 = vrot.slane %v1759_v9, 5  ;;  %v1765_v37 = vshll.u32 %v5676_v17, 16  ;;  %v2179_v14 = vrot.slane %v2177_v52, 5 }
  0x49   : > { %v5850_v17 = vcombine.low %v5626_v28, %v5640_v40  ;;  %v5854_v36 = vcombine.low %v5581_v15, %v5673_v16  ;;  %v4146_v9 = vrot.slane %v5524_v45, 9  ;;  %v1795_v62 = vrot.slane %v1793_v22, 5 }
  0x4a   : > { %4842 = vmatpush3.bf16.msra.mxu0 %v5251_v29  ;;  %v1787_v29 = vshll.u32 %v5708_v56, 16  ;;  %v5862_v52 = vcombine.low %v5690_v4, %v5708_v56  ;;  %v789_v15 = vrot.slane %v5594_v30, 5  ;;  %v4147_v16 = vrot.slane %v5614_v18, 9 }
  0x4b   : > { %4851 = vmatprep.subr.bf16.mxu0 %v5791_v2  ;;  %4676 = vmatmul.mubr.msk.bf16.vlgmr.msra.gmra.mrb[0].mxu1 %vm573_vm3, %v5796_v5  ;;  %v2183_v5 = vshll.u32 %v5724_v23, 16  ;;  %6743 = vst [vmem:[#allocation11_spill] sm:$0xff] %v5854_v36  ;;  %v1772_v22 = vrot.slane %v1770_v61, 4  ;;  %v5878_v4 = vsel %vm5668_vm6, %v4144_v19, %v781_v7  ;;  %v5884_v30 = vsel %vm5668_vm6, %v4145_v57, %v785_v11 }
  0x4c   : > { %4684 = vmatpush3.bf16.msra.mxu1 %v5589_v20  ;;  %v1789_v60 = vrot.slane %v1787_v29, 5  ;;  %4679 = vmatprep.mubr.msk.bf16.mxu1 %vm573_vm3, %v5809_v12  ;;  %v5842_v20 = vld [vmem:[%s6701_s3 + $0x30] sm:$0xff]   ;;  %6744 = vst [vmem:[#allocation12_spill] sm:$0xff] %v5862_v52  ;;  %v1762_v7 = vor.u32 %v1761_v0, %v1758_v39  ;;  %v1779_v61 = vshll.u32 %v5693_v42, 16  ;;  %v801_v42 = vrot.slane %v5646_v44, 5 }
  0x4d   : > { %4836 = vmatmul.mubr.msk.bf16.gmra.mrb[4].mxu0 %vm573_vm3, %v4327_v59  ;;  %4685 = vmatprep.subr.bf16.mxu1 %v5254_v6  ;;  %v4154_v59 = vcombine.low %v774_v35, %v5828_v41  ;;  %v5260_v35 = vld [vmem:[%s6701_s3 + $0x108] sm:$0xff]  }
  0x4e   : > { %4843 = vmatprep.mubr.msk.bf16.mxu0 %vm573_vm3, %v5817_v47  ;;  %v1790_v23 = vor.u32 %v1789_v60, %v1786_v1  ;;  %v2180_v47 = vor.u32 %v2179_v14, %v2176_v24  ;;  %v2185_v60 = vrot.slane %v2183_v5, 5  ;;  %v1775_v1 = vrot.slane %v1773_v55, 5  ;;  %v5947_v44 = vld [vmem:[%s5535_s10 + $0x4c] sm:$0x1] }
  0x4f   : > { %v5909_v24 = vsel %vm5668_vm6, %v4146_v9, %v789_v15  ;;  %v5927_v55 = vcombine.low %v5878_v4, %v5884_v30  ;;  %v797_v14 = vrot.slane %v5629_v21, 5  ;;  %v4149_v9 = vrot.slane %v5640_v40, 9 }
  0x50   : > { %4686 = vmatpush3.bf16.msra.mxu1 %v5254_v6  ;;  %v1791_v29 = vrot.slane %v1790_v23, 4  ;;  %v793_v6 = vrot.slane %v5619_v25, 5  ;;  %v2181_v5 = vrot.slane %v2180_v47, 4  ;;  %v1767_v25 = vrot.slane %v1765_v37, 5  ;;  %v5890_v47 = vld [vmem:[%s5535_s10 + $0x48] sm:$0xf] }
  0x51   : > { %4695 = vmatprep.subr.bf16.mxu1 %v5842_v20  ;;  %v2503_v57 = vshrl.u32 %v5890_v47, 16  ;;  %v2506_v11 = vshll.u32 %v5890_v47, 16  ;;  %v1776_v0 = vor.u32 %v1775_v1, %v1772_v22  ;;  %v4148_v23 = vrot.slane %v5626_v28, 9 }
  0x52   : > { %v5894_v56 = vsel %vm5517_vm2, %v1791_v29, %v1795_v62  ;;  %v5898_v19 = vsel %vm5517_vm2, %v2181_v5, %v2185_v60  ;;  %v5913_v39 = vsel %vm5668_vm6, %v4147_v16, %v793_v6  ;;  %v1763_v29 = vrot.slane %v1762_v7, 4  ;;  %v5262_v60 = vld [vmem:[%s6701_s3 + $0x38] sm:$0xff]  }
  0x53   : > { %4680 = vmatmul.mubr.msk.bf16.gmra.mrb[4].mxu1 %vm573_vm3, %v5850_v17  ;;  %6746 = vst [vmem:[#allocation13_spill] sm:$0xff] %v5894_v56  ;;  %6747 = vst [vmem:[#allocation14_spill] sm:$0xff] %v5898_v19  ;;  %v5937_v62 = vcombine.low %v5909_v24, %v5913_v39  ;;  %v2505_v15 = vrot.slane %v2503_v57, 4  ;;  %v2508_v21 = vrot.slane %v2506_v11, 5  ;;  %v5944_v16 = vcombine.low %v5623_v27, %v5633_v33 }
  0x54   : > { %4687 = vmatprep.mubr.msk.bf16.mxu1 %vm573_vm3, %v4154_v59  ;;  %v4338_v59 = vcombine.low %v5721_v38, %v5890_v47  ;;  %v1777_v38 = vrot.slane %v1776_v0, 4  ;;  %v1781_v6 = vrot.slane %v1779_v61, 5  ;;  %v5960_v27 = vsel %vm5668_vm6, %v4149_v9, %v801_v42  ;;  %v5267_v61 = vld [vmem:[%s6701_s3 + $0x118] sm:$0xff]   ;;  %v6014_v42 = vld [vmem:[%s6701_s3 + $0x120] sm:$0xff]  }
  0x55   : > { %4844 = vmatmul.mubr.msk.bf16.vlgmr.msra.gmra.mrb[0].mxu0 %vm573_vm3, %v5854_v36  ;;  %6748 = vst [vmem:[#allocation15_spill] sm:$0xff] %v5937_v62  ;;  %6749 = vst [vmem:[#allocation16_spill] sm:$0xff] %v5944_v16  ;;  %v5964_v33 = vsel %vm5517_vm2, %v1763_v29, %v1767_v25  ;;  %v2509_v22 = vor.u32 %v2508_v21, %v2505_v15  ;;  %v2512_v1 = vshll.u32 %v5947_v44, 16  ;;  %v6017_v29 = vld [vmem:[%s5469_s27 + $0x44] sm:$0x1]  ;;  %v5270_v21 = vld [vmem:[%s6701_s3 + $0x48] sm:$0xff]  }
  0x56   : > { %4852 = vmatpush3.bf16.msra.mxu0 %v5791_v2  ;;  %4847 = vmatprep.mubr.msk.bf16.mxu0 %vm573_vm3, %v5862_v52  ;;  %v5263_v2 = vld [vmem:[%s6701_s3 + $0x110] sm:$0xff]   ;;  %6750 = vst [vmem:[#allocation17_spill] sm:$0xff] %v5964_v33  ;;  %v5976_v5 = vsel %vm5517_vm2, %v1777_v38, %v1781_v6  ;;  %v5985_v7 = vcombine.low %v5651_v58, %v5964_v33  ;;  %v1035_v38 = vshll.u32 %v6017_v29, 16  ;;  %v6034_v6 = vld [vmem:[%s6022_s15] sm:$0xf] }
  0x57   : > { %4853 = vmatprep.subr.bf16.mxu0 %v5260_v35  ;;  %6751 = vst [vmem:[#allocation18_spill] sm:$0xff] %v5976_v5  ;;  %v5989_v57 = vcombine.low %v5976_v5, %v5894_v56  ;;  %v2510_v11 = vrot.slane %v2509_v22, 4  ;;  %v2514_v0 = vrot.slane %v2512_v1, 5  ;;  %v4170_v15 = vcombine.low %v5614_v18, %v5626_v28  ;;  %v6046_v22 = vld [vmem:[%s6022_s15 + $0x8] sm:$0xf] }
  0x58   : > { %6753 = vst [vmem:[#allocation20_spill] sm:$0xff] %v5985_v7  ;;  %v2837_v18 = vshll.u32 %v6034_v6, 16  ;;  %v6049_v1 = vld [vmem:[%s6022_s15 + $0x4] sm:$0x1]  ;;  %v6171_v52 = vld [vmem:[%s6022_s15 + $0x4c] sm:$0x1] }
  0x59   : > { %6754 = vst [vmem:[#allocation21_spill] sm:$0xff] %v5989_v57  ;;  %v2515_v9 = vsel %vm5517_vm2, %v2510_v11, %v2514_v0  ;;  %v2614_v11 = vrot.slane %v5947_v44, 5  ;;  %v6060_v0 = vld [vmem:[%s6022_s15 + $0x38] sm:$0xf] }
  0x5a   : > { %4854 = vmatpush3.bf16.msra.mxu0 %v5260_v35  ;;  %v5956_v35 = vsel %vm5668_vm6, %v4148_v23, %v797_v14  ;;  %v5995_v23 = vld [vmem:[%s5469_s27 + $0x40] sm:$0xf] }
  0x5b   : > { %4863 = vmatprep.subr.bf16.mxu0 %v5263_v2  ;;  %4688 = vmatmul.mubr.msk.bf16.vlgmr.msra.gmra.mrb[0].mxu1 %vm573_vm3, %v5927_v55  ;;  %v5980_v25 = vcombine.low %v5956_v35, %v5960_v27  ;;  %v1026_v58 = vshrl.u32 %v5995_v23, 16  ;;  %v1029_v14 = vshll.u32 %v5995_v23, 16  ;;  %v4171_v44 = vcombine.low %v5640_v40, %v5995_v23 }
  0x5c   : > { %4696 = vmatpush3.bf16.msra.mxu1 %v5842_v20  ;;  %4691 = vmatprep.mubr.msk.bf16.mxu1 %vm573_vm3, %v5937_v62  ;;  %v5266_v20 = vld [vmem:[%s6701_s3 + $0x40] sm:$0xff]   ;;  %v2935_v40 = vshll.u32 %v6060_v0, 16 }
  0x5d   : > { %4848 = vmatmul.mubr.msk.bf16.gmra.mrb[4].mxu0 %vm573_vm3, %v4338_v59  ;;  %4697 = vmatprep.subr.bf16.mxu1 %v5262_v60  ;;  %6752 = vst [vmem:[#allocation19_spill] sm:$0xff] %v5980_v25  ;;  %v6755_v59 = vcombine.low %v5483_v8, %v5489_v10  ;;  %v4169_v8 = vcombine.low %v5497_v13, %v5524_v45  ;;  %v1028_v10 = vrot.slane %v1026_v58, 4  ;;  %v2834_v45 = vshrl.u32 %v6034_v6, 16 }
  0x5e   : > { %4855 = vmatprep.mubr.msk.bf16.mxu0 %vm573_vm3, %v5944_v16  ;;  %v6038_v13 = vcombine.low %v5701_v48, %v5705_v53  ;;  %v6055_v48 = vld [vmem:[%s6701_s3 + $0x50] sm:$0xff]   ;;  %v4356_v53 = vrot.slane %v5890_v47, 9  ;;  %v2851_v47 = vshll.u32 %v6046_v22, 16 }
  0x5f   : > { %v2836_v58 = vrot.slane %v2834_v45, 4  ;;  %v6090_v45 = vcombine.low %v5759_v46, %v5781_v31 }
  0x60   : > { %4698 = vmatpush3.bf16.msra.mxu1 %v5262_v60  ;;  %v4349_v60 = vcombine.low %v5898_v19, %v2515_v9  ;;  %6756 = vst [vmem:[#allocation22_spill] sm:$0xff] %v6038_v13  ;;  %v2853_v37 = vrot.slane %v2851_v47, 5  ;;  %v6761_v47 = vld [vmem:[#allocation6_spill] sm:$0xff] }
  0x61   : > { %4707 = vmatprep.subr.bf16.mxu1 %v5266_v20  ;;  %6758 = vst [vmem:[#allocation24_spill] sm:$0xff] %v6090_v45 }
  0x63   : > { %4692 = vmatmul.mubr.msk.bf16.gmra.mrb[4].mxu1 %vm573_vm3, %v5980_v25 }
  0x64   : > { %4699 = vmatprep.mubr.msk.bf16.mxu1 %vm573_vm3, %v6755_v59  ;;  %v2848_v59 = vshrl.u32 %v6046_v22, 16 }
  0x65   : > { %4856 = vmatmul.mubr.msk.bf16.vlgmr.msra.gmra.mrb[0].mxu0 %vm573_vm3, %v5985_v7 }
  0x66   : > { %4864 = vmatpush3.bf16.msra.mxu0 %v5263_v2  ;;  %4859 = vmatprep.mubr.msk.bf16.mxu0 %vm573_vm3, %v5989_v57  ;;  %v1031_v2 = vrot.slane %v1029_v14, 5  ;;  %v2839_v14 = vrot.slane %v2837_v18, 5  ;;  %v2615_v18 = vsel %vm5668_vm6, %v4356_v53, %v2614_v11  ;;  %v6120_v53 = vld [vmem:[%s6701_s3 + $0x130] sm:$0xff]  }
  0x67   : > { %4865 = vmatprep.subr.bf16.mxu0 %v5267_v61 }
  0x68   : > { %v1032_v28 = vor.u32 %v1031_v2, %v1028_v10  ;;  %v6074_v10 = vcombine.low %v5739_v32, %v5751_v43  ;;  %v5273_v2 = vld [vmem:[%s6701_s3 + $0x128] sm:$0xff]   ;;  %v6093_v32 = vld [vmem:[%s6022_s15 + $0x20] sm:$0xf]  ;;  %v2840_v46 = vor.u32 %v2839_v14, %v2836_v58  ;;  %v2937_v14 = vrot.slane %v2935_v40, 5 }
  0x69   : > { %v6096_v43 = vld [vmem:[%s6022_s15 + $0x28] sm:$0xf] }
  0x6a   : > { %4866 = vmatpush3.bf16.msra.mxu0 %v5267_v61  ;;  %v6065_v61 = vld [vmem:[%s6022_s15 + $0xc] sm:$0x1]  ;;  %v1033_v9 = vrot.slane %v1032_v28, 4  ;;  %6757 = vst [vmem:[#allocation23_spill] sm:$0xff] %v6074_v10  ;;  %v2850_v28 = vrot.slane %v2848_v59, 4 }
  0x6b   : > { %4875 = vmatprep.subr.bf16.mxu0 %v6014_v42  ;;  %4700 = vmatmul.mubr.msk.bf16.vlgmr.msra.gmra.mrb[0].mxu1 %vm573_vm3, %v4169_v8  ;;  %v2843_v8 = vshll.u32 %v6049_v1, 16  ;;  %v2857_v31 = vshll.u32 %v6065_v61, 16  ;;  %v422_v59 = vld [vmem:[%s6022_s15 + $0x44] sm:$0x1] }
  0x6c   : > { %4708 = vmatpush3.bf16.msra.mxu1 %v5266_v20  ;;  %4703 = vmatprep.mubr.msk.bf16.mxu1 %vm573_vm3, %v4170_v15  ;;  %v1037_v20 = vrot.slane %v1035_v38, 5  ;;  %v6083_v15 = vld [vmem:[%s6022_s15 + $0x18] sm:$0xf]  ;;  %v2932_v38 = vshrl.u32 %v6060_v0, 16  ;;  %v3445_v25 = vrot.slane %v422_v59, 5 }
  0x6d   : > { %4860 = vmatmul.mubr.msk.bf16.gmra.mrb[4].mxu0 %vm573_vm3, %v4349_v60  ;;  %4709 = vmatprep.subr.bf16.mxu1 %v5270_v21  ;;  %v6080_v60 = vld [vmem:[%s6022_s15 + $0x10] sm:$0xf]  ;;  %v6122_v11 = vrot.slane %v2843_v8, 5  ;;  %v2854_v8 = vor.u32 %v2853_v37, %v2850_v28  ;;  %v6146_v40 = vrot.slane %v2857_v31, 5  ;;  %v2879_v33 = vshll.u32 %v6083_v15, 16 }
  0x6e   : > { %4867 = vmatprep.mubr.msk.bf16.mxu0 %vm573_vm3, %v6038_v13  ;;  %v6105_v19 = vsel %vm5517_vm2, %v1033_v9, %v1037_v20  ;;  %v2862_v56 = vshrl.u32 %v6080_v60, 16  ;;  %v420_v20 = vld [vmem:[%s6022_s15 + $0x3c] sm:$0x1]  ;;  %v2934_v58 = vrot.slane %v2932_v38, 4  ;;  %v6142_v9 = vcombine.low %v6093_v32, %v6096_v43  ;;  %v6157_v37 = vld [vmem:[%s6022_s15 + $0x40] sm:$0xf] }
  0x6f   : > { %v6144_v38 = vrot.slane %v2840_v46, 4  ;;  %v2890_v28 = vshrl.u32 %v6093_v32, 16  ;;  %v3325_v46 = vshll.u32 %v6157_v37, 16  ;;  %v3331_v31 = vshll.u32 %v422_v59, 16 }
  0x70   : > { %4710 = vmatpush3.bf16.msra.mxu1 %v5270_v21  ;;  %v4183_v21 = vcombine.low %v5545_v54, %v5661_v51  ;;  %v6759_v54 = vcombine.low %v5530_v49, %v5539_v50  ;;  %v4184_v51 = vcombine.low %v5715_v63, %v5732_v26  ;;  %v6760_v49 = vld [vmem:[#allocation8_spill] sm:$0xff]  ;;  %v4372_v63 = vcombine.low %v6034_v6, %v6046_v22 }
  0x71   : > { %4719 = vmatprep.subr.bf16.mxu1 %v6055_v48  ;;  %v4361_v50 = vcombine.low %v6760_v49, %v2615_v18  ;;  %v6133_v26 = vcombine.low %v6080_v60, %v6083_v15  ;;  %v6148_v18 = vrot.slane %v2862_v56, 4  ;;  %v5274_v49 = vld [vmem:[%s6701_s3 + $0x58] sm:$0xff]   ;;  %v2938_v5 = vor.u32 %v2937_v14, %v2934_v58  ;;  %6762 = vst [vmem:[#allocation8_spill] sm:$0xff] %v6157_v37 }
  0x72   : > { %v3322_v56 = vshrl.u32 %v6157_v37, 16  ;;  %v2893_v13 = vshll.u32 %v6093_v32, 16  ;;  %v4403_v58 = vrot.slane %v6060_v0, 9  ;;  %v3097_v14 = vrot.slane %v420_v20, 5 }
  0x73   : > { %4704 = vmatmul.mubr.msk.bf16.gmra.mrb[4].mxu1 %vm573_vm3, %v4171_v44  ;;  %v2865_v44 = vshll.u32 %v6080_v60, 16  ;;  %v3327_v16 = vrot.slane %v3325_v46, 5  ;;  %v2939_v36 = vrot.slane %v2938_v5, 4  ;;  %v2907_v59 = vshll.u32 %v6096_v43, 16 }
  0x74   : > { %4711 = vmatprep.mubr.msk.bf16.mxu1 %vm573_vm3, %v6759_v54  ;;  %v2941_v54 = vshll.u32 %v420_v20, 16  ;;  %v3324_v7 = vrot.slane %v3322_v56, 4  ;;  %v6200_v20 = vld [vmem:[%s6022_s15 + $0x14] sm:$0x1] }
  0x75   : > { %4868 = vmatmul.mubr.msk.bf16.vlgmr.msra.gmra.mrb[0].mxu0 %vm573_vm3, %v6074_v10  ;;  %v2855_v10 = vrot.slane %v2854_v8, 4  ;;  %v4446_v8 = vrot.slane %v6157_v37, 9  ;;  %v2881_v37 = vrot.slane %v2879_v33, 5  ;;  %v5280_v33 = vld [vmem:[%s6701_s3 + $0x138] sm:$0xff]  }
  0x76   : > { %4876 = vmatpush3.bf16.msra.mxu0 %v6014_v42  ;;  %4871 = vmatprep.mubr.msk.bf16.mxu0 %vm573_vm3, %v6090_v45  ;;  %v2876_v42 = vshrl.u32 %v6083_v15, 16  ;;  %v6163_v45 = vld [vmem:[%s6022_s15 + $0x48] sm:$0xf]  ;;  %v2943_v57 = vrot.slane %v2941_v54, 5  ;;  %v3328_v54 = vor.u32 %v3327_v16, %v3324_v7  ;;  %v3660_v16 = vshll.u32 %v6171_v52, 16 }
  0x77   : > { %4877 = vmatprep.subr.bf16.mxu0 %v5273_v2  ;;  %v3654_v5 = vshll.u32 %v6163_v45, 16  ;;  %v6194_v56 = vsel %vm5668_vm6, %v4446_v8, %v3445_v25  ;;  %v2867_v7 = vrot.slane %v2865_v44, 5  ;;  %v6204_v25 = vld [vmem:[%s6022_s15 + $0x1c] sm:$0x1]  ;;  %v2895_v8 = vrot.slane %v2893_v13, 5 }
  0x78   : > { %v3329_v46 = vrot.slane %v3328_v54, 4  ;;  %v2878_v62 = vrot.slane %v2876_v42, 4  ;;  %v6208_v54 = vsel %vm5517_vm2, %v2939_v36, %v2943_v57  ;;  %v6218_v42 = vld [vmem:[%s6022_s15 + $0x24] sm:$0x1]  ;;  %v4198_v36 = vcombine.low %v5884_v30, %v5909_v24  ;;  %v6243_v24 = vld [vmem:[%s6022_s15 + $0x30] sm:$0xf] }
  0x79   : > { %v6763_v57 = vcombine.low %v6761_v47, %v6105_v19  ;;  %v6764_v30 = vcombine.low %v5828_v41, %v5878_v4  ;;  %v6248_v47 = vsel %vm5517_vm2, %v2855_v10, %v6146_v40  ;;  %v2899_v4 = vshll.u32 %v6218_v42, 16  ;;  %v5283_v10 = vld [vmem:[%s6701_s3 + $0x140] sm:$0xff]  }
  0x7a   : > { %4878 = vmatpush3.bf16.msra.mxu0 %v5273_v2  ;;  %v2904_v2 = vshrl.u32 %v6096_v43, 16  ;;  %v2882_v41 = vor.u32 %v2881_v37, %v2878_v62  ;;  %v6266_v62 = vcombine.low %v6243_v24, %v6060_v0  ;;  %v4199_v37 = vcombine.low %v5913_v39, %v5956_v35 }
  0x7b   : > { %4887 = vmatprep.subr.bf16.mxu0 %v6120_v53  ;;  %4712 = vmatmul.mubr.msk.bf16.vlgmr.msra.gmra.mrb[0].mxu1 %vm573_vm3, %v4183_v21  ;;  %v6182_v21 = vld [vmem:[%s6701_s3 + $0x60] sm:$0xff]   ;;  %v4424_v34 = vcombine.low %v6096_v43, %v6243_v24 }
  0x7c   : > { %4720 = vmatpush3.bf16.msra.mxu1 %v6055_v48  ;;  %4715 = vmatprep.mubr.msk.bf16.mxu1 %vm573_vm3, %v4184_v51  ;;  %v3333_v48 = vrot.slane %v3331_v31, 5  ;;  %v6190_v51 = vsel %vm5668_vm6, %v4403_v58, %v3097_v14  ;;  %v2892_v58 = vrot.slane %v2890_v28, 4  ;;  %v3656_v14 = vrot.slane %v3654_v5, 5 }
  0x7d   : > { %4872 = vmatmul.mubr.msk.bf16.gmra.mrb[4].mxu0 %vm573_vm3, %v4361_v50  ;;  %4721 = vmatprep.subr.bf16.mxu1 %v5274_v49  ;;  %v3651_v50 = vshrl.u32 %v6163_v45, 16  ;;  %v2906_v44 = vrot.slane %v2904_v2, 4  ;;  %v2909_v28 = vrot.slane %v2907_v59, 5  ;;  %v2871_v5 = vshll.u32 %v6200_v20, 16  ;;  %v6234_v59 = vld [vmem:[%s6022_s15 + $0x2c] sm:$0x1] }
  0x7e   : > { %4879 = vmatprep.mubr.msk.bf16.mxu0 %vm573_vm3, %v4372_v63  ;;  %v2896_v40 = vor.u32 %v2895_v8, %v2892_v58  ;;  %v1149_v58 = vrot.slane %v6017_v29, 5  ;;  %v4483_v29 = vrot.slane %v6163_v45, 9 }
  0x7f   : > { %v3653_v63 = vrot.slane %v3651_v50, 4  ;;  %v3662_v50 = vrot.slane %v3660_v16, 5 }
  0x80   : > { %4722 = vmatpush3.bf16.msra.mxu1 %v5274_v49  ;;  %v6212_v49 = vsel %vm5517_vm2, %v3329_v46, %v3333_v48  ;;  %v2846_v48 = vsel %vm5517_vm2, %v6144_v38, %v6122_v11  ;;  %v2868_v11 = vor.u32 %v2867_v7, %v6148_v18  ;;  %v2885_v38 = vshll.u32 %v6204_v25, 16 }
  0x81   : > { %4731 = vmatprep.subr.bf16.mxu1 %v6182_v21  ;;  %v3657_v2 = vor.u32 %v3656_v14, %v3653_v63  ;;  %v2918_v46 = vshrl.u32 %v6243_v24, 16  ;;  %v2921_v63 = vshll.u32 %v6243_v24, 16  ;;  %v2910_v18 = vor.u32 %v2909_v28, %v2906_v44 }
  0x82   : > { %v2913_v7 = vshll.u32 %v6234_v59, 16  ;;  %v4192_v14 = vrot.slane %v5995_v23, 9  ;;  %v2869_v8 = vrot.slane %v2868_v11, 4  ;;  %v2873_v44 = vrot.slane %v2871_v5, 5 }
  0x83   : > { %4716 = vmatmul.mubr.msk.bf16.gmra.mrb[4].mxu1 %vm573_vm3, %v6763_v57  ;;  %v3658_v16 = vrot.slane %v3657_v2, 4  ;;  %v2887_v28 = vrot.slane %v2885_v38, 5  ;;  %v4386_v57 = vcombine.low %v2846_v48, %v6248_v47  ;;  %v2920_v39 = vrot.slane %v2918_v46, 4 }
  0x84   : > { %4723 = vmatprep.mubr.msk.bf16.mxu1 %vm573_vm3, %v6764_v30  ;;  %v2883_v30 = vrot.slane %v2882_v41, 4  ;;  %v2923_v35 = vrot.slane %v2921_v63, 5  ;;  %v2911_v31 = vrot.slane %v2910_v18, 4  ;;  %v2915_v13 = vrot.slane %v2913_v7, 5 }
  0x85   : > { %4880 = vmatmul.mubr.msk.bf16.vlgmr.msra.gmra.mrb[0].mxu0 %vm573_vm3, %v6133_v26  ;;  %v6290_v48 = vsel %vm5668_vm6, %v4192_v14, %v1149_v58  ;;  %v6294_v5 = vsel %vm5517_vm2, %v2869_v8, %v2873_v44  ;;  %v4397_v14 = vrot.slane %v6046_v22, 9  ;;  %v3073_v58 = vrot.slane %v6065_v61, 5  ;;  %v6766_v8 = vld [vmem:[#allocation9_spill] sm:$0xff] }
  0x86   : > { %4888 = vmatpush3.bf16.msra.mxu0 %v6120_v53  ;;  %4883 = vmatprep.mubr.msk.bf16.mxu0 %vm573_vm3, %v6142_v9  ;;  %v3663_v53 = vsel %vm5517_vm2, %v3658_v16, %v3662_v50  ;;  %v5282_v50 = vld [vmem:[%s6701_s3 + $0x68] sm:$0xff]   ;;  %v2897_v16 = vrot.slane %v2896_v40, 4  ;;  %v4200_v63 = vcombine.low %v5960_v27, %v6290_v48  ;;  %v3069_v27 = vrot.slane %v6049_v1, 5 }
  0x87   : > { %4889 = vmatprep.subr.bf16.mxu0 %v5280_v33  ;;  %v6272_v2 = vcombine.low %v6212_v49, %v3663_v53  ;;  %v2901_v53 = vrot.slane %v2899_v4, 5  ;;  %v6316_v4 = vsel %vm5517_vm2, %v2911_v31, %v2915_v13  ;;  %v5285_v31 = vld [vmem:[%s6701_s3 + $0x148] sm:$0xff]   ;;  %v4396_v13 = vrot.slane %v6034_v6, 9 }
  0x88   : > { %v6352_v61 = vsel %vm5668_vm6, %v4397_v14, %v3073_v58  ;;  %v384_v14 = vld [vmem:[%s5469_s27 + $0x4c] sm:$0x1]  ;;  %v6767_v58 = vld [vmem:[#allocation2_spill] sm:$0xff] }
  0x89   : > { %6765 = vst [vmem:[#allocation6_spill] sm:$0xff] %v6272_v2  ;;  %v6280_v2 = vld [vmem:[%s6022_s15 + $0x34] sm:$0x1]  ;;  %v6312_v41 = vsel %vm5517_vm2, %v2897_v16, %v2901_v53  ;;  %v3070_v1 = vsel %vm5668_vm6, %v4396_v13, %v3069_v27  ;;  %v4400_v16 = vrot.slane %v6093_v32, 9  ;;  %v3085_v53 = vrot.slane %v6218_v42, 5 }
  0x8a   : > { %4890 = vmatpush3.bf16.msra.mxu0 %v5280_v33  ;;  %v3762_v33 = vrot.slane %v6171_v52, 5  ;;  %v5284_v52 = vld [vmem:[%s6701_s3 + $0x70] sm:$0xff]   ;;  %v2927_v11 = vshll.u32 %v6280_v2, 16  ;;  %v6328_v18 = vcombine.low %v6312_v41, %v6316_v4  ;;  %v4402_v13 = vrot.slane %v6243_v24, 9 }
  0x8b   : > { %4899 = vmatprep.subr.bf16.mxu0 %v5283_v10  ;;  %4724 = vmatmul.mubr.msk.bf16.vlgmr.msra.gmra.mrb[0].mxu1 %vm573_vm3, %v4198_v36  ;;  %v6299_v36 = vsel %vm5517_vm2, %v2883_v30, %v2887_v28  ;;  %v4398_v28 = vrot.slane %v6080_v60, 9  ;;  %v3077_v30 = vrot.slane %v6200_v20, 5  ;;  %v3093_v27 = vrot.slane %v6280_v2, 5 }
  0x8c   : > { %4732 = vmatpush3.bf16.msra.mxu1 %v6182_v21  ;;  %4727 = vmatprep.mubr.msk.bf16.mxu1 %vm573_vm3, %v4199_v37  ;;  %v2924_v21 = vor.u32 %v2923_v35, %v2920_v39  ;;  %v6307_v38 = vsel %vm5668_vm6, %v4483_v29, %v3762_v33  ;;  %v6324_v40 = vcombine.low %v6294_v5, %v6299_v36  ;;  %v2929_v37 = vrot.slane %v2927_v11, 5 }
  0x8d   : > { %4884 = vmatmul.mubr.msk.bf16.gmra.mrb[4].mxu0 %vm573_vm3, %v6266_v62  ;;  %4733 = vmatprep.subr.bf16.mxu1 %v5282_v50  ;;  %v4488_v46 = vcombine.low %v6194_v56, %v6307_v38  ;;  %v4399_v39 = vrot.slane %v6083_v15, 9  ;;  %v3081_v35 = vrot.slane %v6204_v25, 5  ;;  %v4401_v29 = vrot.slane %v6096_v43, 9 }
  0x8e   : > { %4891 = vmatprep.mubr.msk.bf16.mxu0 %vm573_vm3, %v4386_v57  ;;  %v2925_v7 = vrot.slane %v2924_v21, 4  ;;  %v4408_v57 = vcombine.low %v3070_v1, %v6352_v61  ;;  %v3089_v33 = vrot.slane %v6234_v59, 5  ;;  %v6376_v21 = vld [vmem:[%s5469_s27 + $0x48] sm:$0xf]  ;;  %v6386_v42 = vsel %vm5668_vm6, %v4398_v28, %v3077_v30  ;;  %v5289_v59 = vld [vmem:[%s6701_s3 + $0x80] sm:$0xff]  }
  0x8f   : > { %v1355_v20 = vshrl.u32 %v6376_v21, 16  ;;  %v1358_v25 = vshll.u32 %v6376_v21, 16  ;;  %v4211_v11 = vcombine.low %v5995_v23, %v6376_v21  ;;  %v5290_v23 = vld [vmem:[%s6701_s3 + $0x158] sm:$0xff]   ;;  %v1364_v1 = vshll.u32 %v384_v14, 16  ;;  %v5293_v28 = vld [vmem:[%s6701_s3 + $0x160] sm:$0xff]  }
  0x90   : > { %4734 = vmatpush3.bf16.msra.mxu1 %v5282_v50  ;;  %v6346_v6 = vsel %vm5517_vm2, %v2925_v7, %v2929_v37  ;;  %v5287_v50 = vld [vmem:[%s6701_s3 + $0x78] sm:$0xff]   ;;  %v6429_v2 = vsel %vm5668_vm6, %v4402_v13, %v3093_v27  ;;  %v4229_v43 = vrot.slane %v6376_v21, 9  ;;  %v1466_v24 = vrot.slane %v384_v14, 5  ;;  %v6772_v21 = vld [vmem:[#allocation19_spill] sm:$0xff] }
  0x91   : > { %4743 = vmatprep.subr.bf16.mxu1 %v5284_v52  ;;  %v6359_v44 = vcombine.low %v6346_v6, %v6208_v54  ;;  %v1357_v7 = vrot.slane %v1355_v20, 4  ;;  %v1360_v37 = vrot.slane %v1358_v25, 5  ;;  %v1366_v30 = vrot.slane %v1364_v1, 5  ;;  %v6771_v25 = vld [vmem:[#allocation15_spill] sm:$0xff]  ;;  %v5303_v27 = vld [vmem:[%s6701_s3 + $0x178] sm:$0xff]  }
  0x92   : > { %v4436_v20 = vcombine.low %v6248_v47, %v6294_v5  ;;  %v4437_v5 = vcombine.low %v6299_v36, %v6312_v41  ;;  %v4438_v13 = vcombine.low %v6316_v4, %v6346_v6  ;;  %v5304_v36 = vld [vmem:[%s6701_s3 + $0xa8] sm:$0xff]   ;;  %v4451_v41 = vcombine.low %v6352_v61, %v6386_v42  ;;  %v6773_v4 = vld [vmem:[#allocation10_spill] sm:$0xff] }
  0x93   : > { %4728 = vmatmul.mubr.msk.bf16.gmra.mrb[4].mxu1 %vm573_vm3, %v4200_v63  ;;  %v6774_v6 = vcombine.low %v6208_v54, %v6212_v49  ;;  %v6775_v14 = vld [vmem:[#allocation11_spill] sm:$0xff] }
  0x94   : > { %4735 = vmatprep.mubr.msk.bf16.mxu1 %vm573_vm3, %v6766_v8  ;;  %v1361_v8 = vor.u32 %v1360_v37, %v1357_v7  ;;  %v5321_v7 = vld [vmem:[%s5535_s10] sm:$0xf]  ;;  %v5307_v49 = vld [vmem:[%s6701_s3 + $0x188] sm:$0xff]  }
  0x95   : > { %4892 = vmatmul.mubr.msk.bf16.vlgmr.msra.gmra.mrb[0].mxu0 %vm573_vm3, %v6324_v40  ;;  %v4269_v1 = vrot.slane %v5321_v7, 9 }
  0x96   : > { %4900 = vmatpush3.bf16.msra.mxu0 %v5283_v10  ;;  %4895 = vmatprep.mubr.msk.bf16.mxu0 %vm573_vm3, %v6328_v18  ;;  %v5288_v10 = vld [vmem:[%s6701_s3 + $0x150] sm:$0xff]  }
  0x97   : > { %4901 = vmatprep.subr.bf16.mxu0 %v5285_v31 }
  0x9a   : > { %4902 = vmatpush3.bf16.msra.mxu0 %v5285_v31 }
  0x9b   : > { %4911 = vmatprep.subr.bf16.mxu0 %v5288_v10  ;;  %4736 = vmatmul.mubr.msk.bf16.vlgmr.msra.gmra.mrb[0].mxu1 %vm573_vm3, %v5809_v12  ;;  %v6390_v12 = vsel %vm5668_vm6, %v4399_v39, %v3081_v35  ;;  %v4422_v39 = vcombine.low %v6046_v22, %v6080_v60  ;;  %v6768_v35 = vld [vmem:[#allocation5_spill] sm:$0xff]  ;;  %v4423_v60 = vcombine.low %v6083_v15, %v6093_v32  ;;  %v6770_v15 = vld [vmem:[#allocation8_spill] sm:$0xff] }
  0x9c   : > { %4744 = vmatpush3.bf16.msra.mxu1 %v5284_v52  ;;  %4739 = vmatprep.mubr.msk.bf16.mxu1 %vm573_vm3, %v5850_v17  ;;  %v6398_v52 = vsel %vm5668_vm6, %v4400_v16, %v3085_v53  ;;  %v6402_v17 = vsel %vm5668_vm6, %v4401_v29, %v3089_v33  ;;  %v6408_v63 = vcombine.low %v6386_v42, %v6390_v12  ;;  %v6769_v53 = vld [vmem:[#allocation7_spill] sm:$0xff]  ;;  %v5295_v29 = vld [vmem:[%s6701_s3 + $0x90] sm:$0xff]  }
  0x9d   : > { %4896 = vmatmul.mubr.msk.bf16.gmra.mrb[4].mxu0 %vm573_vm3, %v6359_v44  ;;  %4745 = vmatprep.subr.bf16.mxu1 %v5287_v50  ;;  %v6412_v31 = vcombine.low %v6398_v52, %v6402_v17  ;;  %v5297_v33 = vld [vmem:[%s6701_s3 + $0x168] sm:$0xff]   ;;  %v4425_v32 = vcombine.low %v6060_v0, %v6770_v15  ;;  %v1467_v0 = vsel %vm5668_vm6, %v4229_v43, %v1466_v24  ;;  %v6776_v42 = vld [vmem:[#allocation12_spill] sm:$0xff]  ;;  %v5330_v24 = vld [vmem:[%s5535_s10 + $0x38] sm:$0xf] }
  0x9e   : > { %4903 = vmatprep.mubr.msk.bf16.mxu0 %vm573_vm3, %v4408_v57  ;;  %v1362_v57 = vrot.slane %v1361_v8, 4  ;;  %v4234_v47 = vcombine.low %v6290_v48, %v1467_v0  ;;  %v5305_v48 = vld [vmem:[%s6701_s3 + $0x180] sm:$0xff]   ;;  %v4452_v61 = vcombine.low %v6390_v12, %v6398_v52  ;;  %v4453_v54 = vcombine.low %v6402_v17, %v6429_v2  ;;  %v5309_v12 = vld [vmem:[%s6701_s3 + $0x190] sm:$0xff]   ;;  %v5308_v8 = vld [vmem:[%s6701_s3 + $0xb8] sm:$0xff]  }
  0x9f   : > { %v5322_v52 = vld [vmem:[%s5535_s10 + $0x4] sm:$0x1]  ;;  %v6789_v0 = vld [vmem:[#allocation17_spill] sm:$0xff] }
  0xa0   : > { %4746 = vmatpush3.bf16.msra.mxu1 %v5287_v50  ;;  %v6436_v50 = vcombine.low %v6429_v2, %v6190_v51  ;;  %v1367_v16 = vsel %vm5517_vm2, %v1362_v57, %v1366_v30  ;;  %v1921_v17 = vrot.slane %v5322_v52, 5  ;;  %v6778_v2 = vld [vmem:[#allocation16_spill] sm:$0xff] }
  0xa1   : > { %4755 = vmatprep.subr.bf16.mxu1 %v5289_v59  ;;  %v4222_v22 = vcombine.low %v6105_v19, %v1367_v16  ;;  %v5300_v19 = vld [vmem:[%s6701_s3 + $0x170] sm:$0xff]   ;;  %v6782_v16 = vld [vmem:[#allocation21_spill] sm:$0xff] }
  0xa2   : > { %v6780_v57 = vld [vmem:[#allocation20_spill] sm:$0xff]  ;;  %v1922_v30 = vsel %vm5668_vm6, %v4269_v1, %v1921_v17 }
  0xa3   : > { %4740 = vmatmul.mubr.msk.bf16.gmra.mrb[4].mxu1 %vm573_vm3, %v4211_v11  ;;  %v6494_v11 = vld [vmem:[%s5535_s10 + $0x8] sm:$0xf] }
  0xa4   : > { %4747 = vmatprep.mubr.msk.bf16.mxu1 %vm573_vm3, %v6767_v58  ;;  %v4245_v37 = vcombine.low %v5321_v7, %v6494_v11  ;;  %v6777_v58 = vld [vmem:[#allocation3_spill] sm:$0xff] }
  0xa5   : > { %4904 = vmatmul.mubr.msk.bf16.vlgmr.msra.gmra.mrb[0].mxu0 %vm573_vm3, %v6408_v63 }
  0xa6   : > { %4912 = vmatpush3.bf16.msra.mxu0 %v5288_v10  ;;  %4907 = vmatprep.mubr.msk.bf16.mxu0 %vm573_vm3, %v6412_v31  ;;  %v5291_v10 = vld [vmem:[%s6701_s3 + $0x88] sm:$0xff]  }
  0xa7   : > { %4913 = vmatprep.subr.bf16.mxu0 %v5290_v23 }
  0xaa   : > { %4914 = vmatpush3.bf16.msra.mxu0 %v5290_v23  ;;  %v5306_v23 = vld [vmem:[%s6701_s3 + $0xb0] sm:$0xff]  }
  0xab   : > { %4923 = vmatprep.subr.bf16.mxu0 %v5293_v28  ;;  %4748 = vmatmul.mubr.msk.bf16.vlgmr.msra.gmra.mrb[0].mxu1 %vm573_vm3, %v6768_v35 }
  0xac   : > { %4756 = vmatpush3.bf16.msra.mxu1 %v5289_v59  ;;  %4751 = vmatprep.mubr.msk.bf16.mxu1 %vm573_vm3, %v6769_v53  ;;  %v5302_v59 = vld [vmem:[%s6701_s3 + $0xa0] sm:$0xff]  }
  0xad   : > { %4908 = vmatmul.mubr.msk.bf16.gmra.mrb[4].mxu0 %vm573_vm3, %v6436_v50  ;;  %4757 = vmatprep.subr.bf16.mxu1 %v5291_v10  ;;  %v6783_v53 = vld [vmem:[#allocation22_spill] sm:$0xff] }
  0xae   : > { %4915 = vmatprep.mubr.msk.bf16.mxu0 %vm573_vm3, %v4422_v39  ;;  %v6781_v39 = vld [vmem:[#allocation4_spill] sm:$0xff] }
  0xaf   : > { %v4281_v35 = vcombine.low %v1922_v30, %v6781_v39 }
  0xb0   : > { %4758 = vmatpush3.bf16.msra.mxu1 %v5291_v10  ;;  %v5310_v10 = vld [vmem:[%s6701_s3 + $0xc0] sm:$0xff]  }
  0xb1   : > { %4767 = vmatprep.subr.bf16.mxu1 %v5295_v29 }
  0xb3   : > { %4752 = vmatmul.mubr.msk.bf16.gmra.mrb[4].mxu1 %vm573_vm3, %v4222_v22 }
  0xb4   : > { %4759 = vmatprep.mubr.msk.bf16.mxu1 %vm573_vm3, %v5927_v55  ;;  %v5299_v55 = vld [vmem:[%s6701_s3 + $0x98] sm:$0xff]  }
  0xb5   : > { %4916 = vmatmul.mubr.msk.bf16.vlgmr.msra.gmra.mrb[0].mxu0 %vm573_vm3, %v4423_v60  ;;  %v5317_v60 = vld [vmem:[%s6701_s3 + $0x1a8] sm:$0xff]  }
  0xb6   : > { %4924 = vmatpush3.bf16.msra.mxu0 %v5293_v28  ;;  %4919 = vmatprep.mubr.msk.bf16.mxu0 %vm573_vm3, %v4424_v34  ;;  %v6779_v28 = vcombine.low %v6190_v51, %v6194_v56  ;;  %v5311_v51 = vld [vmem:[%s6701_s3 + $0x198] sm:$0xff]   ;;  %v6786_v34 = vld [vmem:[#allocation24_spill] sm:$0xff] }
  0xb7   : > { %4925 = vmatprep.subr.bf16.mxu0 %v5297_v33 }
  0xba   : > { %4926 = vmatpush3.bf16.msra.mxu0 %v5297_v33  ;;  %v5326_v33 = vld [vmem:[%s5535_s10 + $0x20] sm:$0xf] }
  0xbb   : > { %4935 = vmatprep.subr.bf16.mxu0 %v5300_v19  ;;  %4760 = vmatmul.mubr.msk.bf16.vlgmr.msra.gmra.mrb[0].mxu1 %vm573_vm3, %v6771_v25  ;;  %v6788_v25 = vld [vmem:[#allocation18_spill] sm:$0xff] }
  0xbc   : > { %4768 = vmatpush3.bf16.msra.mxu1 %v5295_v29  ;;  %4763 = vmatprep.mubr.msk.bf16.mxu1 %vm573_vm3, %v6772_v21  ;;  %v5323_v29 = vld [vmem:[%s5535_s10 + $0x10] sm:$0xf]  ;;  %v4311_v21 = vcombine.low %v6789_v0, %v6788_v25 }
  0xbd   : > { %4920 = vmatmul.mubr.msk.bf16.gmra.mrb[4].mxu0 %vm573_vm3, %v4425_v32  ;;  %4769 = vmatprep.subr.bf16.mxu1 %v5299_v55  ;;  %v4295_v22 = vcombine.low %v6494_v11, %v5323_v29  ;;  %v5328_v32 = vld [vmem:[%s5535_s10 + $0x30] sm:$0xf] }
  0xbe   : > { %4927 = vmatprep.mubr.msk.bf16.mxu0 %vm573_vm3, %v4436_v20 }
  0xc0   : > { %4770 = vmatpush3.bf16.msra.mxu1 %v5299_v55  ;;  %v5331_v55 = vld [vmem:[%s5535_s10 + $0x40] sm:$0xf] }
  0xc1   : > { %4779 = vmatprep.subr.bf16.mxu1 %v5302_v59  ;;  %v4298_v20 = vcombine.low %v5330_v24, %v5331_v55 }
  0xc3   : > { %4764 = vmatmul.mubr.msk.bf16.gmra.mrb[4].mxu1 %vm573_vm3, %v4234_v47 }
  0xc4   : > { %4771 = vmatprep.mubr.msk.bf16.mxu1 %vm573_vm3, %v4245_v37 }
  0xc5   : > { %4928 = vmatmul.mubr.msk.bf16.vlgmr.msra.gmra.mrb[0].mxu0 %vm573_vm3, %v4437_v5 }
  0xc6   : > { %4936 = vmatpush3.bf16.msra.mxu0 %v5300_v19  ;;  %4931 = vmatprep.mubr.msk.bf16.mxu0 %vm573_vm3, %v4438_v13 }
  0xc7   : > { %4937 = vmatprep.subr.bf16.mxu0 %v5303_v27 }
  0xca   : > { %4938 = vmatpush3.bf16.msra.mxu0 %v5303_v27 }
  0xcb   : > { %4947 = vmatprep.subr.bf16.mxu0 %v5305_v48  ;;  %4772 = vmatmul.mubr.msk.bf16.vlgmr.msra.gmra.mrb[0].mxu1 %vm573_vm3, %v6773_v4 }
  0xcc   : > { %4780 = vmatpush3.bf16.msra.mxu1 %v5302_v59  ;;  %4775 = vmatprep.mubr.msk.bf16.mxu1 %vm573_vm3, %v6775_v14  ;;  %v6791_v59 = vld [vmem:[#allocation14_spill] sm:$0xff] }
  0xcd   : > { %4932 = vmatmul.mubr.msk.bf16.gmra.mrb[4].mxu0 %vm573_vm3, %v6774_v6  ;;  %4781 = vmatprep.subr.bf16.mxu1 %v5304_v36 }
  0xce   : > { %4939 = vmatprep.mubr.msk.bf16.mxu0 %vm573_vm3, %v4451_v41 }
  0xd0   : > { %4782 = vmatpush3.bf16.msra.mxu1 %v5304_v36 }
  0xd1   : > { %4791 = vmatprep.subr.bf16.mxu1 %v5306_v23 }
  0xd3   : > { %4776 = vmatmul.mubr.msk.bf16.gmra.mrb[4].mxu1 %vm573_vm3, %v6776_v42 }
  0xd4   : > { %4783 = vmatprep.mubr.msk.bf16.mxu1 %vm573_vm3, %v6777_v58 }
  0xd5   : > { %4940 = vmatmul.mubr.msk.bf16.vlgmr.msra.gmra.mrb[0].mxu0 %vm573_vm3, %v4452_v61 }
  0xd6   : > { %4948 = vmatpush3.bf16.msra.mxu0 %v5305_v48  ;;  %4943 = vmatprep.mubr.msk.bf16.mxu0 %vm573_vm3, %v4453_v54 }
  0xd7   : > { %4949 = vmatprep.subr.bf16.mxu0 %v5307_v49 }
  0xda   : > { %4950 = vmatpush3.bf16.msra.mxu0 %v5307_v49 }
  0xdb   : > { %4959 = vmatprep.subr.bf16.mxu0 %v5309_v12  ;;  %4784 = vmatmul.mubr.msk.bf16.vlgmr.msra.gmra.mrb[0].mxu1 %vm573_vm3, %v6778_v2 }
  0xdc   : > { %4792 = vmatpush3.bf16.msra.mxu1 %v5306_v23  ;;  %4787 = vmatprep.mubr.msk.bf16.mxu1 %vm573_vm3, %v6780_v57 }
  0xdd   : > { %4944 = vmatmul.mubr.msk.bf16.gmra.mrb[4].mxu0 %vm573_vm3, %v6779_v28  ;;  %4793 = vmatprep.subr.bf16.mxu1 %v5308_v8 }
  0xde   : > { %4951 = vmatprep.mubr.msk.bf16.mxu0 %vm573_vm3, %v6133_v26  ;;  %v5313_v26 = vld [vmem:[%s6701_s3 + $0xc8] sm:$0xff]  }
  0xe0   : > { %4794 = vmatpush3.bf16.msra.mxu1 %v5308_v8 }
  0xe1   : > { %4803 = vmatprep.subr.bf16.mxu1 %v5310_v10 }
  0xe3   : > { %4788 = vmatmul.mubr.msk.bf16.gmra.mrb[4].mxu1 %vm573_vm3, %v6782_v16 }
  0xe4   : > { %4795 = vmatprep.mubr.msk.bf16.mxu1 %vm573_vm3, %v4281_v35 }
  0xe5   : > { %4952 = vmatmul.mubr.msk.bf16.vlgmr.msra.gmra.mrb[0].mxu0 %vm573_vm3, %v6142_v9  ;;  %v6784_v9 = vcombine.low %v6770_v15, %v6163_v45  ;;  %v5324_v45 = vld [vmem:[%s6701_s3 + $0xd0] sm:$0xff]   ;;  %v5327_v15 = vld [vmem:[%s5535_s10 + $0x28] sm:$0xf] }
  0xe6   : > { %4960 = vmatpush3.bf16.msra.mxu0 %v5309_v12  ;;  %4955 = vmatprep.mubr.msk.bf16.mxu0 %vm573_vm3, %v6266_v62  ;;  %v6785_v62 = vld [vmem:[#allocation23_spill] sm:$0xff]  ;;  %v4297_v43 = vcombine.low %v5327_v15, %v5328_v32 }
  0xe7   : > { %4961 = vmatprep.subr.bf16.mxu0 %v5311_v51 }
  0xea   : > { %4962 = vmatpush3.bf16.msra.mxu0 %v5311_v51 }
  0xeb   : > { %4971 = vmatprep.subr.bf16.mxu0 %v5314_v3  ;;  %4796 = vmatmul.mubr.msk.bf16.vlgmr.msra.gmra.mrb[0].mxu1 %vm573_vm3, %v6783_v53 }
  0xec   : > { %4804 = vmatpush3.bf16.msra.mxu1 %v5310_v10  ;;  %4799 = vmatprep.mubr.msk.bf16.mxu1 %vm573_vm3, %v6785_v62 }
  0xed   : > { %4956 = vmatmul.mubr.msk.bf16.gmra.mrb[4].mxu0 %vm573_vm3, %v6784_v9  ;;  %4805 = vmatprep.subr.bf16.mxu1 %v5313_v26 }
  0xee   : > { %4963 = vmatprep.mubr.msk.bf16.mxu0 %vm573_vm3, %v6324_v40  ;;  %v5325_v40 = vld [vmem:[%s5535_s10 + $0x18] sm:$0xf]  ;;  %s4113_s10 = sshll.u32 %s6810_s18, 3 }
  0xef   : > { %v4296_v19 = vcombine.low %v5325_v40, %v5326_v33  ;;  %s353_s30 = sadd.s32 %s4114_s29, %s4113_s10 }
  0xf0   : > { %4806 = vmatpush3.bf16.msra.mxu1 %v5313_v26  ;;  %s4115_s6 = sshll.u32 %s353_s30, 3 }
  0xf1   : > { %4983 = vmatprep.subr.bf16.mxu1 %v5324_v45  ;;  %s6644_s9 = scalar_lea.vmem %s6702_s4, %s4115_s6 }
  0xf3   : > { %4800 = vmatmul.mubr.msk.bf16.gmra.mrb[4].mxu1 %vm573_vm3, %v6786_v34 }
  0xf4   : > { %4807 = vmatprep.mubr.msk.bf16.mxu1 %vm573_vm3, %v4295_v22 }
  0xf5   : > { %4964 = vmatmul.mubr.msk.bf16.vlgmr.msra.gmra.mrb[0].mxu0 %vm573_vm3, %v6328_v18  ;;  %v6787_v18 = vld [vmem:[#allocation6_spill] sm:$0xff] }
  0xf6   : > { %4972 = vmatpush3.bf16.msra.mxu0 %v5314_v3  ;;  %4967 = vmatprep.mubr.msk.bf16.mxu0 %vm573_vm3, %v6359_v44  ;;  %v5329_v44 = vld [vmem:[%s6701_s3 + $0xd8] sm:$0xff]  }
  0xf7   : > { %4973 = vmatprep.subr.bf16.mxu0 %v5317_v60 }
  0xfa   : > { %4974 = vmatpush3.bf16.msra.mxu0 %v5317_v60 }
  0xfb   : > { %4808 = vmatmul.mubr.msk.bf16.vlgmr.msra.gmra.mrb[0].mxu1 %vm573_vm3, %v4296_v19 }
  0xfc   : > { %4985 = vmatpush3.bf16.msra.mxu1 %v5324_v45  ;;  %4811 = vmatprep.mubr.msk.bf16.mxu1 %vm573_vm3, %v4297_v43 }
  0xfd   : > { %4968 = vmatmul.mubr.msk.bf16.gmra.mrb[4].mxu0 %vm573_vm3, %v6787_v18  ;;  %4984 = vmatprep.subr.bf16.mxu1 %v5329_v44 }
  0xfe   : > { %4975 = vmatprep.mubr.msk.bf16.mxu0 %vm573_vm3, %v6408_v63  ;;  %v6790_v63 = vld [vmem:[#allocation13_spill] sm:$0xff] }
  0xff   : > { %v6792_v47 = vcombine.low %v6790_v63, %v6791_v59 }
 0x100   : > { %4986 = vmatpush3.bf16.msra.mxu1 %v5329_v44 }
 0x103   : > { %4812 = vmatmul.mubr.msk.bf16.gmra.mrb[4].mxu1 %vm573_vm3, %v4298_v20 }
 0x104   : > { %4823 = vmatprep.mubr.msk.bf16.mxu1 %vm573_vm3, %v4311_v21 }
 0x105   : > { %4976 = vmatmul.mubr.msk.bf16.vlgmr.msra.gmra.mrb[0].mxu0 %vm573_vm3, %v6412_v31 }
 0x106   : > { %4979 = vmatprep.mubr.msk.bf16.mxu0 %vm573_vm3, %v6436_v50 }
 0x10d   : > { %4980 = vmatmul.mubr.msk.bf16.gmra.mrb[4].mxu0 %vm573_vm3, %v4488_v46 }
 0x10f   : > { %4824 = vmatmul.mubr.msk.bf16.vlgmr.msra.gmra.mrb[4].mxu1 %vm573_vm3, %v6792_v47 }
 0x1ce   : > { %v4809_v31 = vpop.f32.mrb[0].mxu1 }
 0x1cf   : > { %v2134_v5 = vpop.f32.mrb[1].mxu1 }
 0x1d0   : > { %v4810_v11 = vpop.f32.mrb[2].mxu1 }
 0x1d1   : > { %v2137_v50 = vpop.f32.mrb[3].mxu1 }
 0x1d8   : > { %v4977_v56 = vpop.f32.mrb[0].mxu0 }
 0x1d9   : > { %v4987_v38 = vadd.f32 %v4977_v56, %v4809_v31  ;;  %v3820_v46 = vpop.f32.mrb[1].mxu0 }
 0x1da   : > { %v4988_v7 = vadd.f32 %v3820_v46, %v2134_v5  ;;  %v4978_v37 = vpop.f32.mrb[2].mxu0 }
 0x1db   : > { %3861 = vst.msk [vmem:[%s6644_s9 + $0x10] sm:$0xff] %vm573_vm3, %v4987_v38  ;;  %v4989_v13 = vadd.f32 %v4978_v37, %v4810_v11  ;;  %v3823_v27 = vpop.f32.mrb[3].mxu0  ;;  %v3890_v41 = vmul.f32 %v4987_v38, %v4987_v38  ;;  %v3870_v61 = vsel %vm573_vm3, %v4987_v38, 0.0 }
 0x1dc   : > { %3859 = vst.msk [vmem:[%s6644_s9] sm:$0xff] %vm573_vm3, %v4988_v7  ;;  %v3888_v48 = vmul.f32 %v4988_v7, %v4988_v7  ;;  %v4990_v36 = vadd.f32 %v3823_v27, %v2137_v50  ;;  %v3867_v4 = vsel %vm573_vm3, %v4988_v7, 0.0 }
 0x1dd   : > { %3862 = vst.msk [vmem:[%s6644_s9 + $0x18] sm:$0xff] %vm573_vm3, %v4989_v13  ;;  %v3891_v49 = vmul.f32 %v4989_v13, %v4989_v13  ;;  %v3899_v8 = vsel %vm573_vm3, %v3890_v41, 0.0  ;;  %v3872_v1 = vsel %vm573_vm3, %v4989_v13, 0.0 }
 0x1de   : > { %3860 = vst.msk [vmem:[%s6644_s9 + $0x8] sm:$0xff] %vm573_vm3, %v4990_v36  ;;  %v3868_v6 = vsel %vm573_vm3, %v4990_v36, 0.0  ;;  %v3889_v14 = vmul.f32 %v4990_v36, %v4990_v36  ;;  %v3896_v54 = vsel %vm573_vm3, %v3888_v48, 0.0 }
 0x1df   : > { %v3869_v23 = vadd.f32 %v3868_v6, %v3867_v4  ;;  %v3901_v39 = vsel %vm573_vm3, %v3891_v49, 0.0 }
 0x1e0   : > { %v3897_v42 = vsel %vm573_vm3, %v3889_v14, 0.0  ;;  %v4981_v58 = vpop.f32.mrb[4].mxu0 }
 0x1e1   : > { %v3871_v12 = vadd.f32 %v3870_v61, %v3869_v23  ;;  %v3898_v52 = vadd.f32 %v3897_v42, %v3896_v54  ;;  %v3836_v17 = vpop.f32.mrb[5].mxu0 }
 0x1e2   : > { %v4982_v2 = vpop.f32.mrb[6].mxu0  ;;  %v4825_v57 = vpop.f32.mrb[4].mxu1 }
 0x1e3   : > { %v3900_v28 = vadd.f32 %v3899_v8, %v3898_v52  ;;  %v3873_v30 = vadd.f32 %v3872_v1, %v3871_v12  ;;  %v3839_v10 = vpop.f32.mrb[7].mxu0  ;;  %v2271_v35 = vpop.f32.mrb[5].mxu1  ;;  %v4991_v51 = vadd.f32 %v4981_v58, %v4825_v57 }
 0x1e4   : > { %v4826_v16 = vpop.f32.mrb[6].mxu1  ;;  %v4992_v3 = vadd.f32 %v3836_v17, %v2271_v35 }
 0x1e5   : > { %v3902_v26 = vadd.f32 %v3901_v39, %v3900_v28  ;;  %3865 = vst.msk [vmem:[%s6644_s9 + $0x30] sm:$0xff] %vm573_vm3, %v4991_v51  ;;  %v2274_v53 = vpop.f32.mrb[7].mxu1  ;;  %v4993_v9 = vadd.f32 %v4982_v2, %v4826_v16  ;;  %v3894_v60 = vmul.f32 %v4991_v51, %v4991_v51  ;;  %v3878_v32 = vsel %vm573_vm3, %v4991_v51, 0.0 }
 0x1e6   : > { %3863 = vst.msk [vmem:[%s6644_s9 + $0x20] sm:$0xff] %vm573_vm3, %v4992_v3  ;;  %v3874_v62 = vsel %vm573_vm3, %v4992_v3, 0.0  ;;  %v3892_v29 = vmul.f32 %v4992_v3, %v4992_v3  ;;  %v4994_v22 = vadd.f32 %v3839_v10, %v2274_v53 }
 0x1e7   : > { %v3875_v45 = vadd.f32 %v3874_v62, %v3873_v30  ;;  %3866 = vst.msk [vmem:[%s6644_s9 + $0x38] sm:$0xff] %vm573_vm3, %v4993_v9  ;;  %v3895_v43 = vmul.f32 %v4993_v9, %v4993_v9  ;;  %v3907_v55 = vsel %vm573_vm3, %v3894_v60, 0.0  ;;  %v3880_v20 = vsel %vm573_vm3, %v4993_v9, 0.0 }
 0x1e8   : > { %v3903_v34 = vsel %vm573_vm3, %v3892_v29, 0.0  ;;  %3864 = vst.msk [vmem:[%s6644_s9 + $0x28] sm:$0xff] %vm573_vm3, %v4994_v22  ;;  %v3876_v40 = vsel %vm573_vm3, %v4994_v22, 0.0  ;;  %v3893_v33 = vmul.f32 %v4994_v22, %v4994_v22 }
 0x1e9   : > { %v3904_v19 = vadd.f32 %v3903_v34, %v3902_v26  ;;  %v3877_v15 = vadd.f32 %v3876_v40, %v3875_v45  ;;  %v3909_v21 = vsel %vm573_vm3, %v3895_v43, 0.0 }
 0x1ea   : > { %v3905_v18 = vsel %vm573_vm3, %v3893_v33, 0.0 }
 0x1eb   : > { %v3879_v44 = vadd.f32 %v3878_v32, %v3877_v15  ;;  %v3906_v24 = vadd.f32 %v3905_v18, %v3904_v19 }
 0x1ed   : > { %v3881_v25 = vadd.f32 %v3880_v20, %v3879_v44  ;;  %v3908_v0 = vadd.f32 %v3907_v55, %v3906_v24 }
 0x1ef   : > { %v3882_v63 = vrot.slane %v3881_v25, 4  ;;  %v3910_v59 = vadd.f32 %v3909_v21, %v3908_v0 }
 0x1f1   : > { %v3883_v47 = vadd.f32 %v3882_v63, %v3881_v25  ;;  %v3911_v31 = vrot.slane %v3910_v59, 4 }
 0x1f3   : > { %v3884_v5 = vrot.slane %v3883_v47, 2  ;;  %v3912_v11 = vadd.f32 %v3911_v31, %v3910_v59 }
 0x1f5   : > { %v3885_v50 = vadd.f32 %v3884_v5, %v3883_v47  ;;  %v3913_v56 = vrot.slane %v3912_v11, 2 }
 0x1f7   : > { %v3886_v38 = vrot.slane %v3885_v50, 1  ;;  %v3914_v46 = vadd.f32 %v3913_v56, %v3912_v11 }
 0x1f9   : > { %v3915_v7 = vrot.slane %v3914_v46, 1  ;;  %v3887_v37 = vadd.f32 %v3886_v38, %v3885_v50 }
 0x1fb   : > { %v3916_v13 = vadd.f32 %v3915_v7, %v3914_v46 }
 0x1fd   : > { %v3918_v27 = vsel %vm3917_vm7, %v3887_v37, %v3916_v13 }
 0x1fe   : > { %3920 = vst.msk [vmem:[%s363_s16] sm:$0x3] %vm3919_vm8, %v3918_v27 }
 0x1ff PF: > { %s16_s22 = sadd.s32 1, %s5370_s22   ;;  %s6793_s18 = smov %s5362_s20 }
 0x200   : > { %p13_p10 = scmp.ge.s32.totalorder %s16_s22, 18   ;;  %s6794_s19 = smov %s5366_s21 }
 0x201   : > { %s6795_s20 = smov %s6798_s23  ;;  %s6796_s21 = smov %s6802_s24 }
 0x202   :  { %15 = sbr.rel (!%p13_p10) target bundleno = 3 (0x3), region = 110 }

</bundles_post_ra>
